<compile_context>
chip_gen: v7x
topology: tpu7x:2x2x1
jax: 0.10.0
libtpu: 0.0.40
codegen_flags: <defaults>
</compile_context>

<pallas_src>
import functools

import numpy as np
import jax
import jax.numpy as jnp
from jax.experimental import pallas as pl
from jax.experimental.pallas import tpu as pltpu


def _round_up(n, m):
    return ((n + m - 1) // m) * m


# ----------------------------- kernel ---------------------------------------

def _mlp_chain_kernel(layer_meta, x_ref, w_ref, b_ref, out_ref):
    """Fused chain of linear layers on one row tile.

    layer_meta: static tuple of (row_off, d_in, d_out, relu_after) per layer.
    w_ref: (total_rows, 256) bf16 flat-packed weights; layer i occupies rows
           [row_off, row_off + d_in) and lanes [0, d_out).
    b_ref: (L, 1, 256) f32 packed biases.
    """
    h = x_ref[...]                                       # (tile_rows, 256) f32
    for i, (off, d_in, d_out, relu) in enumerate(layer_meta):
        w = w_ref[off:off + d_in, :d_out]                # (d_in, d_out) bf16, static slice
        b = b_ref[i, :, :d_out]                          # (1, d_out) f32
        # bf16 operands -> single-pass MXU; accumulate + bias + ReLU in f32.
        h = jnp.dot(h.astype(jnp.bfloat16), w,
                    preferred_element_type=jnp.float32) + b
        if relu:
            h = jnp.maximum(h, 0.0)
    out_ref[...] = h.astype(out_ref.dtype)


# ----------------------------- one-time param preprocessing ------------------

def _fuse_linear_chain(params, relu_flags):
    """Fold consecutive linear layers that have no activation between them.

    (x @ W1 + b1) @ W2 + b2 == x @ (W1 @ W2) + (b1 @ W2 + b2) -- exact math;
    merges encoder-final (8->4) with decoder-first (4->8) into one 8->8 layer.
    """
    fused, fused_relu = [], []
    i, L = 0, len(params)
    while i < L:
        w, b = params[i]
        r = relu_flags[i]
        while (not r) and (i + 1 < L):
            w2, b2 = params[i + 1]
            w = w @ w2
            b = b @ w2 + b2
            r = relu_flags[i + 1]
            i += 1
        fused.append((w, b))
        fused_relu.append(bool(r))
        i += 1
    return fused, fused_relu


_ROW_ALIGN = 16  # bf16 packs 2 rows/sublane; keep each layer's row offset tile-aligned


def prepare_packed_params(params, relu_flags):
    """One-time host-side prep (hoisted out of the per-call path).

    Fuses the two no-activation layers around the rank-4 bottleneck, then packs
    all weights into one flat (rows, 256) bf16 array (layers concatenated along
    the sublane axis, row offsets 16-aligned) and biases into a tiny f32 pack.
    """
    np_params = [(np.asarray(w, np.float32), np.asarray(b, np.float32))
                 for w, b in params]
    fparams, frelu = _fuse_linear_chain(np_params, list(relu_flags))
    L = len(fparams)
    lane_w = max(w.shape[1] for w, _ in fparams)            # 256

    offsets, off = [], 0
    for w, _ in fparams:
        offsets.append(off)
        off = _round_up(off + w.shape[0], _ROW_ALIGN)
    total_rows = _round_up(off, 8)

    w_pack = np.zeros((total_rows, lane_w), np.float32)
    b_pack = np.zeros((L, 1, lane_w), np.float32)
    layer_meta = []
    for i, ((w, b), r) in enumerate(zip(fparams, frelu)):
        d_in, d_out = w.shape
        w_pack[offsets[i]:offsets[i] + d_in, :d_out] = w
        b_pack[i, :, :d_out] = b
        layer_meta.append((offsets[i], d_in, d_out, bool(r)))

    return (jnp.asarray(w_pack, dtype=jnp.bfloat16),   # bf16 matmul operands
            jnp.asarray(b_pack, dtype=jnp.float32),    # biases kept f32 (11 KB)
            tuple(layer_meta))


# ----------------------------- wrapper ---------------------------------------

def _pick_tile_rows(n_rows):
    """Row-tile heuristic: aim for >= 4 grid steps (keeps both v7x TensorCores
    fed via the parallel grid axis and preserves DMA/compute overlap) while
    capping at 1024 rows (v5e/v6e DMA-efficiency sweet spot); multiple of 8."""
    tile = _round_up(max(1, pl.cdiv(n_rows, 4)), 8)
    return max(8, min(1024, tile))


def mlp_module_4_short(x, packed, *, tile_rows=None):
    """x: (N, 256) float32.  packed: output of prepare_packed_params."""
    w_pack, b_pack, layer_meta = packed
    N, C_in = x.shape
    C_out = layer_meta[-1][2]
    if tile_rows is None:
        tile_rows = _pick_tile_rows(N)

    # cdiv grid; the (possibly partial) last block is handled by Pallas edge
    # masking -- rows are independent, so no host-side pad / slice round trip.
    grid_m = pl.cdiv(N, tile_rows)

    kernel = functools.partial(_mlp_chain_kernel, layer_meta)

    return pl.pallas_call(
        kernel,
        out_shape=jax.ShapeDtypeStruct((N, C_out), x.dtype),
        grid=(grid_m,),
        in_specs=[
            pl.BlockSpec((tile_rows, C_in), lambda i: (i, 0)),
            # constant index_map -> weight/bias packs DMA'd once, VMEM-resident
            # across the whole row grid (<0.4 MB total after de-padding).
            pl.BlockSpec(w_pack.shape, lambda i: (0, 0)),
            pl.BlockSpec(b_pack.shape, lambda i: (0, 0, 0)),
        ],
        out_specs=pl.BlockSpec((tile_rows, C_out), lambda i: (i, 0)),
        compiler_params=pltpu.CompilerParams(
            dimension_semantics=("parallel",)),
    )(x, w_pack, b_pack)


# ----------------------------- param init ------------------------------------

def init_params(key):
    """Deterministic weights for both MLPs (encoder then decoder)."""
    enc_dims = [256, 128, 64, 32, 16, 8, 4]
    dec_dims = [4, 8, 16, 32, 64, 128, 256]

    params = []
    relu_flags = []

    def add_mlp(dims, key):
        for li in range(len(dims) - 1):
            d_in, d_out = dims[li], dims[li + 1]
            key, kw, kb = jax.random.split(key, 3)
            bound = 1.0 / jnp.sqrt(d_in)  # matches torch.nn.Linear default init range
            w = jax.random.uniform(kw, (d_in, d_out), jnp.float32, -bound, bound)
            b = jax.random.uniform(kb, (1, d_out), jnp.float32, -bound, bound)
            params.append((w, b))
            relu_flags.append(li != len(dims) - 2)  # no activation after final layer
        return key

    key = add_mlp(enc_dims, key)
    key = add_mlp(dec_dims, key)
    return params, relu_flags


# ----------------------------- references ------------------------------------

def reference_forward(x, params, relu_flags):
    """Plain-JAX f32 reference (matches the PyTorch module exactly)."""
    h = x
    for (w, b), r in zip(params, relu_flags):
        h = h @ w + b
        if r:
            h = jnp.maximum(h, 0.0)
    return h


def packed_reference(x, packed):
    """Matched-numerics reference: same fused chain, bf16 operands, f32 accum."""
    w_pack, b_pack, layer_meta = packed
    h = x
    for i, (off, d_in, d_out, relu) in enumerate(layer_meta):
        w = w_pack[off:off + d_in, :d_out]
        b = b_pack[i, 0, :d_out]
        h = jnp.dot(h.astype(jnp.bfloat16), w,
                    preferred_element_type=jnp.float32) + b
        if relu:
            h = jnp.maximum(h, 0.0)
    return h


# ----------------------------- main -------------------------------------------

if __name__ == "__main__":
    key = jax.random.PRNGKey(0)
    key, kx = jax.random.split(key)

    N = 500        # number of descriptors (deliberately not a multiple of the tile)
    C = 256        # descriptor dimension
    x = jax.random.normal(kx, (N, C), jnp.float32)

    params, relu_flags = init_params(key)
    packed = prepare_packed_params(params, relu_flags)   # one-time host prep

    out = mlp_module_4_short(x, packed)
    out = jax.block_until_ready(out)
    assert out.shape == (N, 256)

    # (1) Tight check against a matched-numerics reference (same bf16-operand /
    #     f32-accumulation math) -- verifies the kernel itself.
    ref_matched = packed_reference(x, packed)
    assert jnp.allclose(out, ref_matched, atol=5e-3, rtol=5e-3), \
        "mismatch vs matched-precision reference"

    # (2) Check against the full-f32 PyTorch-equivalent reference; bf16 matmul
    #     operands contribute ~0.2-0.4% relative error per layer over 11 layers.
    ref_f32 = reference_forward(x, params, relu_flags)
    assert jnp.allclose(out, ref_f32, atol=3e-2, rtol=3e-2), \
        "mismatch vs f32 reference"

    print("KERNEL_OK")
</pallas_src>

<mosaic_0001>
module attributes {stable_mosaic.version = 11 : i64} {
  func.func @_mlp_chain_kernel(%arg0: i32, %arg1: memref<128x256xf32, #tpu.memory_space<vmem>>, %arg2: memref<768x256xbf16, #tpu.memory_space<vmem>>, %arg3: memref<11x1x256xf32, #tpu.memory_space<vmem>>, %arg4: memref<128x256xf32, #tpu.memory_space<vmem>>) attributes {dimension_semantics = [#tpu.dimension_semantics<parallel>], iteration_bounds = array<i64: 4>, scalar_prefetch = 0 : i64, scratch_operands = 0 : i64, tpu.core_type = #tpu.core_type<tc>, window_params = [{transform_indices = @transform_0, window_bounds = array<i64: 128, 256>}, {pipeline_mode = #tpu.pipeline_mode<synchronous>, transform_indices = @transform_1, window_bounds = array<i64: 768, 256>}, {pipeline_mode = #tpu.pipeline_mode<synchronous>, transform_indices = @transform_2, window_bounds = array<i64: 11, 1, 256>}, {transform_indices = @transform_3, window_bounds = array<i64: 128, 256>}]} {
    %c0 = arith.constant 0 : index
    %c0_0 = arith.constant 0 : index
    %0 = vector.load %arg1[%c0, %c0_0] : memref<128x256xf32, #tpu.memory_space<vmem>>, vector<128x256xf32>
    %c0_1 = arith.constant 0 : index
    %c0_2 = arith.constant 0 : index
    %1 = vector.load %arg2[%c0_1, %c0_2] : memref<768x256xbf16, #tpu.memory_space<vmem>>, vector<256x128xbf16>
    %c0_3 = arith.constant 0 : index
    %c0_4 = arith.constant 0 : index
    %c0_5 = arith.constant 0 : index
    %2 = vector.load %arg3[%c0_3, %c0_4, %c0_5] : memref<11x1x256xf32, #tpu.memory_space<vmem>>, vector<1x1x128xf32>
    %3 = vector.shape_cast %2 : vector<1x1x128xf32> to vector<1x128xf32>
    %4 = arith.truncf %0 : vector<128x256xf32> to vector<128x256xbf16>
    %cst = arith.constant dense<0.000000e+00> : vector<128x128xf32>
    %5 = tpu.matmul %4, %1, %cst {dimension_numbers = #tpu.dot_dimension_numbers<[1], [0], [0], [1], [0, 0, 1, 1], [], []>} : vector<128x256xbf16>, vector<256x128xbf16>, vector<128x128xf32> -> vector<128x128xf32>
    %6 = vector.broadcast %3 : vector<1x128xf32> to vector<128x128xf32>
    %7 = arith.addf %5, %6 : vector<128x128xf32>
    %cst_6 = arith.constant 0.000000e+00 : f32
    %8 = vector.broadcast %cst_6 : f32 to vector<128x128xf32>
    %9 = arith.maximumf %7, %8 : vector<128x128xf32>
    %c256 = arith.constant 256 : index
    %c0_7 = arith.constant 0 : index
    %10 = vector.load %arg2[%c256, %c0_7] : memref<768x256xbf16, #tpu.memory_space<vmem>>, vector<128x64xbf16>
    %c1 = arith.constant 1 : index
    %c0_8 = arith.constant 0 : index
    %c0_9 = arith.constant 0 : index
    %11 = vector.load %arg3[%c1, %c0_8, %c0_9] : memref<11x1x256xf32, #tpu.memory_space<vmem>>, vector<1x1x64xf32>
    %12 = vector.shape_cast %11 : vector<1x1x64xf32> to vector<1x64xf32>
    %13 = arith.truncf %9 : vector<128x128xf32> to vector<128x128xbf16>
    %cst_10 = arith.constant dense<0.000000e+00> : vector<128x64xf32>
    %14 = tpu.matmul %13, %10, %cst_10 {dimension_numbers = #tpu.dot_dimension_numbers<[1], [0], [0], [1], [0, 0, 1, 1], [], []>} : vector<128x128xbf16>, vector<128x64xbf16>, vector<128x64xf32> -> vector<128x64xf32>
    %15 = vector.broadcast %12 : vector<1x64xf32> to vector<128x64xf32>
    %16 = arith.addf %14, %15 : vector<128x64xf32>
    %cst_11 = arith.constant 0.000000e+00 : f32
    %17 = vector.broadcast %cst_11 : f32 to vector<128x64xf32>
    %18 = arith.maximumf %16, %17 : vector<128x64xf32>
    %c384 = arith.constant 384 : index
    %c0_12 = arith.constant 0 : index
    %19 = vector.load %arg2[%c384, %c0_12] : memref<768x256xbf16, #tpu.memory_space<vmem>>, vector<64x32xbf16>
    %c2 = arith.constant 2 : index
    %c0_13 = arith.constant 0 : index
    %c0_14 = arith.constant 0 : index
    %20 = vector.load %arg3[%c2, %c0_13, %c0_14] : memref<11x1x256xf32, #tpu.memory_space<vmem>>, vector<1x1x32xf32>
    %21 = vector.shape_cast %20 : vector<1x1x32xf32> to vector<1x32xf32>
    %22 = arith.truncf %18 : vector<128x64xf32> to vector<128x64xbf16>
    %cst_15 = arith.constant dense<0.000000e+00> : vector<128x32xf32>
    %23 = tpu.matmul %22, %19, %cst_15 {dimension_numbers = #tpu.dot_dimension_numbers<[1], [0], [0], [1], [0, 0, 1, 1], [], []>} : vector<128x64xbf16>, vector<64x32xbf16>, vector<128x32xf32> -> vector<128x32xf32>
    %24 = vector.broadcast %21 : vector<1x32xf32> to vector<128x32xf32>
    %25 = arith.addf %23, %24 : vector<128x32xf32>
    %cst_16 = arith.constant 0.000000e+00 : f32
    %26 = vector.broadcast %cst_16 : f32 to vector<128x32xf32>
    %27 = arith.maximumf %25, %26 : vector<128x32xf32>
    %c448 = arith.constant 448 : index
    %c0_17 = arith.constant 0 : index
    %28 = vector.load %arg2[%c448, %c0_17] : memref<768x256xbf16, #tpu.memory_space<vmem>>, vector<32x16xbf16>
    %c3 = arith.constant 3 : index
    %c0_18 = arith.constant 0 : index
    %c0_19 = arith.constant 0 : index
    %29 = vector.load %arg3[%c3, %c0_18, %c0_19] : memref<11x1x256xf32, #tpu.memory_space<vmem>>, vector<1x1x16xf32>
    %30 = vector.shape_cast %29 : vector<1x1x16xf32> to vector<1x16xf32>
    %31 = arith.truncf %27 : vector<128x32xf32> to vector<128x32xbf16>
    %cst_20 = arith.constant dense<0.000000e+00> : vector<128x16xf32>
    %32 = tpu.matmul %31, %28, %cst_20 {dimension_numbers = #tpu.dot_dimension_numbers<[1], [0], [0], [1], [0, 0, 1, 1], [], []>} : vector<128x32xbf16>, vector<32x16xbf16>, vector<128x16xf32> -> vector<128x16xf32>
    %33 = vector.broadcast %30 : vector<1x16xf32> to vector<128x16xf32>
    %34 = arith.addf %32, %33 : vector<128x16xf32>
    %cst_21 = arith.constant 0.000000e+00 : f32
    %35 = vector.broadcast %cst_21 : f32 to vector<128x16xf32>
    %36 = arith.maximumf %34, %35 : vector<128x16xf32>
    %c480 = arith.constant 480 : index
    %c0_22 = arith.constant 0 : index
    %37 = vector.load %arg2[%c480, %c0_22] : memref<768x256xbf16, #tpu.memory_space<vmem>>, vector<16x8xbf16>
    %c4 = arith.constant 4 : index
    %c0_23 = arith.constant 0 : index
    %c0_24 = arith.constant 0 : index
    %38 = vector.load %arg3[%c4, %c0_23, %c0_24] : memref<11x1x256xf32, #tpu.memory_space<vmem>>, vector<1x1x8xf32>
    %39 = vector.shape_cast %38 : vector<1x1x8xf32> to vector<1x8xf32>
    %40 = arith.truncf %36 : vector<128x16xf32> to vector<128x16xbf16>
    %cst_25 = arith.constant dense<0.000000e+00> : vector<128x8xf32>
    %41 = tpu.matmul %40, %37, %cst_25 {dimension_numbers = #tpu.dot_dimension_numbers<[1], [0], [0], [1], [0, 0, 1, 1], [], []>} : vector<128x16xbf16>, vector<16x8xbf16>, vector<128x8xf32> -> vector<128x8xf32>
    %42 = vector.broadcast %39 : vector<1x8xf32> to vector<128x8xf32>
    %43 = arith.addf %41, %42 : vector<128x8xf32>
    %cst_26 = arith.constant 0.000000e+00 : f32
    %44 = vector.broadcast %cst_26 : f32 to vector<128x8xf32>
    %45 = arith.maximumf %43, %44 : vector<128x8xf32>
    %c496 = arith.constant 496 : index
    %c0_27 = arith.constant 0 : index
    %46 = vector.load %arg2[%c496, %c0_27] : memref<768x256xbf16, #tpu.memory_space<vmem>>, vector<8x8xbf16>
    %c5 = arith.constant 5 : index
    %c0_28 = arith.constant 0 : index
    %c0_29 = arith.constant 0 : index
    %47 = vector.load %arg3[%c5, %c0_28, %c0_29] : memref<11x1x256xf32, #tpu.memory_space<vmem>>, vector<1x1x8xf32>
    %48 = vector.shape_cast %47 : vector<1x1x8xf32> to vector<1x8xf32>
    %49 = arith.truncf %45 : vector<128x8xf32> to vector<128x8xbf16>
    %cst_30 = arith.constant dense<0.000000e+00> : vector<128x8xf32>
    %50 = tpu.matmul %49, %46, %cst_30 {dimension_numbers = #tpu.dot_dimension_numbers<[1], [0], [0], [1], [0, 0, 1, 1], [], []>} : vector<128x8xbf16>, vector<8x8xbf16>, vector<128x8xf32> -> vector<128x8xf32>
    %51 = vector.broadcast %48 : vector<1x8xf32> to vector<128x8xf32>
    %52 = arith.addf %50, %51 : vector<128x8xf32>
    %cst_31 = arith.constant 0.000000e+00 : f32
    %53 = vector.broadcast %cst_31 : f32 to vector<128x8xf32>
    %54 = arith.maximumf %52, %53 : vector<128x8xf32>
    %c512 = arith.constant 512 : index
    %c0_32 = arith.constant 0 : index
    %55 = vector.load %arg2[%c512, %c0_32] : memref<768x256xbf16, #tpu.memory_space<vmem>>, vector<8x16xbf16>
    %c6 = arith.constant 6 : index
    %c0_33 = arith.constant 0 : index
    %c0_34 = arith.constant 0 : index
    %56 = vector.load %arg3[%c6, %c0_33, %c0_34] : memref<11x1x256xf32, #tpu.memory_space<vmem>>, vector<1x1x16xf32>
    %57 = vector.shape_cast %56 : vector<1x1x16xf32> to vector<1x16xf32>
    %58 = arith.truncf %54 : vector<128x8xf32> to vector<128x8xbf16>
    %cst_35 = arith.constant dense<0.000000e+00> : vector<128x16xf32>
    %59 = tpu.matmul %58, %55, %cst_35 {dimension_numbers = #tpu.dot_dimension_numbers<[1], [0], [0], [1], [0, 0, 1, 1], [], []>} : vector<128x8xbf16>, vector<8x16xbf16>, vector<128x16xf32> -> vector<128x16xf32>
    %60 = vector.broadcast %57 : vector<1x16xf32> to vector<128x16xf32>
    %61 = arith.addf %59, %60 : vector<128x16xf32>
    %cst_36 = arith.constant 0.000000e+00 : f32
    %62 = vector.broadcast %cst_36 : f32 to vector<128x16xf32>
    %63 = arith.maximumf %61, %62 : vector<128x16xf32>
    %c528 = arith.constant 528 : index
    %c0_37 = arith.constant 0 : index
    %64 = vector.load %arg2[%c528, %c0_37] : memref<768x256xbf16, #tpu.memory_space<vmem>>, vector<16x32xbf16>
    %c7 = arith.constant 7 : index
    %c0_38 = arith.constant 0 : index
    %c0_39 = arith.constant 0 : index
    %65 = vector.load %arg3[%c7, %c0_38, %c0_39] : memref<11x1x256xf32, #tpu.memory_space<vmem>>, vector<1x1x32xf32>
    %66 = vector.shape_cast %65 : vector<1x1x32xf32> to vector<1x32xf32>
    %67 = arith.truncf %63 : vector<128x16xf32> to vector<128x16xbf16>
    %cst_40 = arith.constant dense<0.000000e+00> : vector<128x32xf32>
    %68 = tpu.matmul %67, %64, %cst_40 {dimension_numbers = #tpu.dot_dimension_numbers<[1], [0], [0], [1], [0, 0, 1, 1], [], []>} : vector<128x16xbf16>, vector<16x32xbf16>, vector<128x32xf32> -> vector<128x32xf32>
    %69 = vector.broadcast %66 : vector<1x32xf32> to vector<128x32xf32>
    %70 = arith.addf %68, %69 : vector<128x32xf32>
    %cst_41 = arith.constant 0.000000e+00 : f32
    %71 = vector.broadcast %cst_41 : f32 to vector<128x32xf32>
    %72 = arith.maximumf %70, %71 : vector<128x32xf32>
    %c544 = arith.constant 544 : index
    %c0_42 = arith.constant 0 : index
    %73 = vector.load %arg2[%c544, %c0_42] : memref<768x256xbf16, #tpu.memory_space<vmem>>, vector<32x64xbf16>
    %c8 = arith.constant 8 : index
    %c0_43 = arith.constant 0 : index
    %c0_44 = arith.constant 0 : index
    %74 = vector.load %arg3[%c8, %c0_43, %c0_44] : memref<11x1x256xf32, #tpu.memory_space<vmem>>, vector<1x1x64xf32>
    %75 = vector.shape_cast %74 : vector<1x1x64xf32> to vector<1x64xf32>
    %76 = arith.truncf %72 : vector<128x32xf32> to vector<128x32xbf16>
    %cst_45 = arith.constant dense<0.000000e+00> : vector<128x64xf32>
    %77 = tpu.matmul %76, %73, %cst_45 {dimension_numbers = #tpu.dot_dimension_numbers<[1], [0], [0], [1], [0, 0, 1, 1], [], []>} : vector<128x32xbf16>, vector<32x64xbf16>, vector<128x64xf32> -> vector<128x64xf32>
    %78 = vector.broadcast %75 : vector<1x64xf32> to vector<128x64xf32>
    %79 = arith.addf %77, %78 : vector<128x64xf32>
    %cst_46 = arith.constant 0.000000e+00 : f32
    %80 = vector.broadcast %cst_46 : f32 to vector<128x64xf32>
    %81 = arith.maximumf %79, %80 : vector<128x64xf32>
    %c576 = arith.constant 576 : index
    %c0_47 = arith.constant 0 : index
    %82 = vector.load %arg2[%c576, %c0_47] : memref<768x256xbf16, #tpu.memory_space<vmem>>, vector<64x128xbf16>
    %c9 = arith.constant 9 : index
    %c0_48 = arith.constant 0 : index
    %c0_49 = arith.constant 0 : index
    %83 = vector.load %arg3[%c9, %c0_48, %c0_49] : memref<11x1x256xf32, #tpu.memory_space<vmem>>, vector<1x1x128xf32>
    %84 = vector.shape_cast %83 : vector<1x1x128xf32> to vector<1x128xf32>
    %85 = arith.truncf %81 : vector<128x64xf32> to vector<128x64xbf16>
    %cst_50 = arith.constant dense<0.000000e+00> : vector<128x128xf32>
    %86 = tpu.matmul %85, %82, %cst_50 {dimension_numbers = #tpu.dot_dimension_numbers<[1], [0], [0], [1], [0, 0, 1, 1], [], []>} : vector<128x64xbf16>, vector<64x128xbf16>, vector<128x128xf32> -> vector<128x128xf32>
    %87 = vector.broadcast %84 : vector<1x128xf32> to vector<128x128xf32>
    %88 = arith.addf %86, %87 : vector<128x128xf32>
    %cst_51 = arith.constant 0.000000e+00 : f32
    %89 = vector.broadcast %cst_51 : f32 to vector<128x128xf32>
    %90 = arith.maximumf %88, %89 : vector<128x128xf32>
    %c640 = arith.constant 640 : index
    %c0_52 = arith.constant 0 : index
    %91 = vector.load %arg2[%c640, %c0_52] : memref<768x256xbf16, #tpu.memory_space<vmem>>, vector<128x256xbf16>
    %c10 = arith.constant 10 : index
    %c0_53 = arith.constant 0 : index
    %c0_54 = arith.constant 0 : index
    %92 = vector.load %arg3[%c10, %c0_53, %c0_54] : memref<11x1x256xf32, #tpu.memory_space<vmem>>, vector<1x1x256xf32>
    %93 = vector.shape_cast %92 : vector<1x1x256xf32> to vector<1x256xf32>
    %94 = arith.truncf %90 : vector<128x128xf32> to vector<128x128xbf16>
    %cst_55 = arith.constant dense<0.000000e+00> : vector<128x256xf32>
    %95 = tpu.matmul %94, %91, %cst_55 {dimension_numbers = #tpu.dot_dimension_numbers<[1], [0], [0], [1], [0, 0, 1, 1], [], []>} : vector<128x128xbf16>, vector<128x256xbf16>, vector<128x256xf32> -> vector<128x256xf32>
    %96 = vector.broadcast %93 : vector<1x256xf32> to vector<128x256xf32>
    %97 = arith.addf %95, %96 : vector<128x256xf32>
    %c0_56 = arith.constant 0 : index
    %c0_57 = arith.constant 0 : index
    %98 = vector.load %arg4[%c0_56, %c0_57] : memref<128x256xf32, #tpu.memory_space<vmem>>, vector<128x256xf32>
    tpu.vector_store %arg4[%c0_56, %c0_57], %97 {strides = array<i32>} : memref<128x256xf32, #tpu.memory_space<vmem>>, vector<128x256xf32>,
    return
  }
  func.func @transform_0(%arg0: i32) -> (i32, i32) {
    %c0_i32 = arith.constant 0 : i32
    %c0_i32_0 = arith.constant 0 : i32
    return %arg0, %c0_i32 : i32, i32
  }
  func.func @transform_1(%arg0: i32) -> (i32, i32) {
    %c0_i32 = arith.constant 0 : i32
    %c0_i32_0 = arith.constant 0 : i32
    %c0_i32_1 = arith.constant 0 : i32
    return %c0_i32, %c0_i32_0 : i32, i32
  }
  func.func @transform_2(%arg0: i32) -> (i32, i32, i32) {
    %c0_i32 = arith.constant 0 : i32
    %c0_i32_0 = arith.constant 0 : i32
    %c0_i32_1 = arith.constant 0 : i32
    %c0_i32_2 = arith.constant 0 : i32
    return %c0_i32, %c0_i32_0, %c0_i32_1 : i32, i32, i32
  }
  func.func @transform_3(%arg0: i32) -> (i32, i32) {
    %c0_i32 = arith.constant 0 : i32
    %c0_i32_0 = arith.constant 0 : i32
    return %arg0, %c0_i32 : i32, i32
  }
}

</mosaic_0001>

<bundles_post_ra>
// kernel: tpu_custom_call.1
= control target key start
LH: loop header
LB: loop body
LE: loop exit
PB: predicated region body
PF: predicated region fallthrough
CT: control target
= control target key end

     0   :  { %8 = vsyncpa [#allocation3], 0  ;;  %s3756_s0 = inlined_call_operand.hbm [shape: f32[500,256], index: 0, kind: input, shape index: {}]   ;;  %s3757_s1 = inlined_call_operand.hbm [shape: bf16[768,256], index: 1, kind: input, shape index: {}]   ;;  %s3758_s2 = inlined_call_operand.hbm [shape: f32[11,1,256], index: 2, kind: input, shape index: {}]   ;;  %s3759_s3 = inlined_call_operand.hbm [shape: f32[500,256], index: 3, kind: output, shape index: {}]  }
   0x1   :  { %10 = vsyncpa [#allocation3 + $0x1], 0 }
   0x2   :  { %11 = vsyncpa [#allocation6], 0 }
   0x3   :  { %12 = vsyncpa [#allocation4], 0 }
   0x4   :  { %14 = vsyncpa [#allocation4 + $0x1], 0  ;;  %s3307_s12 = smov 0   ;;  %s3309_s13 = smov 0  }
   0x5   :  { %s3311_s14 = smov 0   ;;  %s3313_s15 = smov 0  }
   0x6 LB: > { %s3328_s16 = sadd.s32 4294967295, %s3272_s15   ;;  %s2453_s17 = sadd.s32 4294967294, %s3272_s15   ;;  %s3272_s15 = sphi %s3313_s15, %s3779_s15   ;;  %s3268_s14 = sphi %s3311_s14, %s3778_s14   ;;  %s3264_s13 = sphi %s3309_s13, %s3777_s13   ;;  %s3260_s12 = sphi %s3307_s12, %s3776_s12  }
   0x7   : > { %s3332_s18 = sadd.s32 1, %s3272_s15   ;;  %s27_s19 = sadd.s32 1, %s3268_s14 }
   0x8   : > { %s24_s20 = ssub.s32 %s3272_s15, %s3332_s18  ;;  %p34_p0 = scmp.ne.s32.totalorder %s3268_s14, %s3264_s13 }
   0x9   : > { %p25_p1 = scmp.eq.s32.totalorder %s24_s20, 0  ;;  %p35_p2 = scmp.eq.s32.totalorder %s3272_s15, 0 }
   0xa   : > { %p40_p3 = scmp.ne.s32.totalorder %s3264_s13, %s3260_s12  ;;  %p3760_p4 = scmp.eq.s32.totalorder %s3328_s16, 0 }
   0xb   : > { %s3344_s21 = scalar_select %p25_p1, %s3268_s14, %s27_s19  }
   0xc   : > { %p3346_p5 = por %p35_p2, %p34_p0  ;;  %p3352_p6 = por %p3760_p4, %p40_p3 }
   0xd   : > { %p106_p7 = scmp.eq.s32.totalorder %s3328_s16, 3  ;;  %p112_p8 = scmp.eq.s32.totalorder %s2453_s17, 3 }
   0xe   : > { %s3763_s22 = scalar_select %p3346_p5, 1, 0 }
   0xf   : > { %s3764_s23 = scalar_select %p3352_p6, 1, 0 }
  0x10   : > { %p2454_p9 = scmp.ge.s32.totalorder %s3272_s15, 1  ;;  %p119_p10 = scmp.lt.s32.totalorder %s3272_s15, 5 }
  0x11   : > { %p3359_p11 = por %p106_p7, %p34_p0  ;;  %p3363_p12 = por %p112_p8, %p40_p3 }
  0x12   : > { %p3367_p13 = pnand %p2454_p9, %p119_p10  ;;  %s3274_s27 = smov [#allocation5]  }
  0x13   : > { %s3765_s24 = scalar_select %p3359_p11, 1, 0 }
  0x14   : > { %s3766_s25 = scalar_select %p3363_p12, 1, 0 }
  0x15   : > { %s3767_s26 = scalar_select %p3367_p13, 1, 0 }
  0x16   : > { %p2997_p1 = pneg %p3367_p13  ;;  %s131_s28 = sshll.u32 %s3274_s27, 4  ;;  %s132_s28 = int_to_ptr.vmem [resolvable:$true] %s131_s28 }
  0x17   : > { %s3275_s30 = smov [#allocation7]   ;;  %s3118_s7 = scalar_lea.hbm %s3757_s1, 12288 }
  0x18   : > { %p3375_p2 = pnand %p2997_p1, %p3760_p4  ;;  %s144_s4 = sshll.u32 %s3275_s30, 4  ;;  %s3379_s4 = int_to_ptr.vmem [resolvable:$true] %s144_s4 }
  0x19   : > { %p3119_p0 = scmp.ne.s32.totalorder %s3757_s1, %s3118_s7  ;;  %p3125_p9 = scmp.lt.u32.totalorder %s3118_s7, %s3757_s1 }
  0x1a   : > { %p3120_p3 = pneg %p3375_p2 }
  0x1c   : > { %p3121_p7 = pnand %p3120_p3, %p3119_p0 }
  0x1e   : > { %p3122_p8 = pneg %p3121_p7 }
  0x20   : > { %p3127_p10 = pnand %p3125_p9, %p3122_p8 }
  0x22   : > { %3130 = shalt.err (!%p3127_p10)
}
  0x23   : > { %s3131_s17 = scalar_lea.vmem %s132_s28, 12288  ;;  %p3139_p11 = scmp.lt.s32.totalorder %s132_s28, %s132_s28 }
  0x24   : > { %p3132_p1 = scmp.ne.s32.totalorder %s132_s28, %s3131_s17  ;;  %p3140_p6 = scmp.lt.s32.totalorder %s3131_s17, %s3131_s17 }
  0x26   : > { %p3134_p4 = pnand %p3132_p1, %p3120_p3  ;;  %p3141_p13 = por %p3140_p6, %p3139_p11 }
  0x28   : > { %p3135_p12 = pneg %p3134_p4 }
  0x2a   : > { %p3142_p5 = pnand %p3141_p13, %p3135_p12 }
  0x2c   : > { %3145 = shalt.err (!%p3142_p5)
}
  0x2d   : > { %s3276_s19 = smov 128   ;;  %s3277_s20 = smov 8  }
  0x2e   : > { %3000 = dma.hbm_to_vmem [thread:$0]  (!%p3375_p2), %s3757_s1, 12288, %s132_s28, [#allocation6], %s3276_s19, %s3276_s19, %s3277_s20  }
  0x2f   : > { %s3146_s7 = scalar_lea.hbm %s3758_s2, 352 }
  0x30   : > { %p3147_p4 = scmp.ne.s32.totalorder %s3758_s2, %s3146_s7  ;;  %p3153_p11 = scmp.lt.u32.totalorder %s3146_s7, %s3758_s2 }
  0x32   : > { %p3149_p5 = pnand %p3147_p4, %p3120_p3 }
  0x34   : > { %p3150_p6 = pneg %p3149_p5 }
  0x36   : > { %p3155_p12 = pnand %p3153_p11, %p3150_p6 }
  0x38   : > { %3158 = shalt.err (!%p3155_p12)
}
  0x39   : > { %s3159_s28 = scalar_lea.vmem %s3379_s4, 352  ;;  %p3167_p8 = scmp.lt.s32.totalorder %s3379_s4, %s3379_s4 }
  0x3a   : > { %p3160_p13 = scmp.ne.s32.totalorder %s3379_s4, %s3159_s28  ;;  %p3168_p9 = scmp.lt.s32.totalorder %s3159_s28, %s3159_s28 }
  0x3c   : > { %p3162_p0 = pnand %p3160_p13, %p3120_p3  ;;  %p3169_p10 = por %p3168_p9, %p3167_p8 }
  0x3e   : > { %p3163_p7 = pneg %p3162_p0 }
  0x40   : > { %p3170_p1 = pnand %p3169_p10, %p3163_p7 }
  0x42   : > { %3173 = shalt.err (!%p3170_p1)
}
  0x43   : > { %s3278_s17 = smov 32   ;;  %s3279_s19 = smov 2  }
  0x44   : > { %3003 = dma.hbm_to_vmem [thread:$0]  (!%p3375_p2), %s3758_s2, 352, %s3379_s4, [#allocation6], %s3278_s17, %s3278_s17, %s3279_s19  }
  0x45   : > { %p2457_p4 = scmp.ge.s32.totalorder %s3272_s15, 4 }
  0x46   : > { %p3769_p3 = scmp.ne.s32.totalorder (!%p2457_p4), %s3763_s22, 0 }
  0x47   : > { %154 = sbr.rel (%p2457_p4) target bundleno = 113 (0x71), region = 24 }
  0x4e   : > { %157 = sbr.rel (!%p3769_p3) target bundleno = 113 (0x71), region = 28  ;;  %s158_s30 = sand.u32 (%p3769_p3), 1, %s3268_s14  }
  0x4f   : > { %s2459_s5 = sshll.u32 (%p3769_p3), %s3272_s15, 4  ;;  %s2458_s6 = sshll.u32 (%p3769_p3), %s158_s30, 8 }
  0x50   : > { %s164_s7 = ssub.s32 (%p3769_p3), 63, %s2459_s5  ;;  %s3436_s9 = scalar_lea.sflag (%p3769_p3), [#allocation3], %s158_s30 }
  0x51   : > { %p165_p5 = scmp.lt.s32.totalorder (%p3769_p3), %s164_s7, 16  ;;  %s162_s4 = scalar_lea.vmem (%p3769_p3), [#allocation2], %s2458_s6 }
  0x55   : > { %s3781_s7 = smov (!%p165_p5, %s164_s7), 16 }
  0x56   : > { %s3433_s8 = sshll.u32 %s3781_s7, 8 }
  0x57   : > { %s170_s29 = ssub.s32 4096, %s3433_s8 }
  0x58   : > { %171 = vsyncadd %s3436_s9, %s170_s29  ;;  %p2462_p2 = scmp.ne.s32.totalorder %s3433_s8, 0  ;;  %s2613_s22 = sshll.u32 %s3272_s15, 12 }
  0x59   : > { %s3444_s28 = scalar_lea.hbm %s3756_s0, %s2613_s22  ;;  %s177_s17 = sshll.u32 %s162_s4, 4  ;;  %s3446_s17 = int_to_ptr.vmem [resolvable:$true] %s177_s17 }
  0x5a   : > { %s3174_s19 = scalar_lea.hbm %s3444_s28, %s3433_s8  ;;  %s3178_s30 = scalar_lea.hbm %s3756_s0, 16128 }
  0x5b   : > { %p3175_p6 = scmp.ne.s32.totalorder %s3444_s28, %s3174_s19  ;;  %p3179_p13 = scmp.lt.u32.totalorder %s3444_s28, %s3756_s0 }
  0x5c   : > { %p3180_p0 = scmp.lt.u32.totalorder %s3178_s30, %s3174_s19  ;;  %p3182_p8 = scmp.lt.u32.totalorder %s3174_s19, %s3444_s28 }
  0x5d   : > { %p3176_p11 = pnand %p3175_p6, %p2462_p2 }
  0x5e   : > { %p3181_p7 = por %p3180_p0, %p3179_p13 }
  0x5f   : > { %p3177_p12 = pneg %p3176_p11 }
  0x60   : > { %p3183_p9 = por %p3182_p8, %p3181_p7 }
  0x62   : > { %p3184_p10 = pnand %p3183_p9, %p3177_p12 }
  0x64   : > { %3187 = shalt.err (!%p3184_p10)
}
  0x65   : > { %s3188_s7 = scalar_lea.vmem %s3446_s17, %s3433_s8  ;;  %s3280_s29 = smov [#allocation2]  }
  0x66   : > { %p3189_p1 = scmp.ne.s32.totalorder %s3446_s17, %s3188_s7  ;;  %s3192_s4 = sshll.u32 %s3280_s29, 4  ;;  %s3193_s4 = int_to_ptr.vmem [resolvable:$false] %s3192_s4 }
  0x67   : > { %s3194_s22 = scalar_lea.vmem %s3193_s4, 8192  ;;  %p3195_p5 = scmp.lt.s32.totalorder %s3446_s17, %s3193_s4 }
  0x68   : > { %p3190_p4 = pnand %p3189_p1, %p2462_p2  ;;  %p3196_p6 = scmp.lt.s32.totalorder %s3194_s22, %s3188_s7 }
  0x6a   : > { %p3191_p3 = pneg %p3190_p4  ;;  %p3197_p11 = por %p3196_p6, %p3195_p5 }
  0x6c   : > { %p3198_p13 = pnand %p3197_p11, %p3191_p3 }
  0x6e   : > { %3201 = shalt.err (!%p3198_p13)
}
  0x6f   : > { %s3281_s10 = smov 256   ;;  %s3282_s11 = smov 16  }
  0x70   : > { %183 = dma.hbm_to_vmem [thread:$0]  (%p2462_p2), %s3444_s28, %s3433_s8, %s3446_s17, %s3436_s9, %s3281_s10, %s3281_s10, %s3282_s11  }
  0x71 PF: > { %p3770_p12 = scmp.ne.s32.totalorder %s3767_s26, 0 }
  0x72   : > { %s3476_s19 = sand.u32 (!%p3770_p12), 1, %s3264_s13   ;;  %p3771_p0 = scmp.ne.s32.totalorder (!%p3770_p12), %s3764_s23, 0 }
  0x73   : > { %189 = sbr.rel (%p3770_p12) target bundleno = 2689 (0xa81), region = 32  ;;  %s2468_s20 = sshll.u32 (!%p3770_p12), %s3476_s19, 8 }
  0x74   : > { %s192_s27 = scalar_lea.sflag (!%p3770_p12), [#allocation3], %s3476_s19  ;;  %s3482_s30 = scalar_lea.vmem (!%p3770_p12), [#allocation2], %s2468_s20 }
  0x7a   : > { %3247 = dma.done.wait (%p3771_p0), %s192_s27, 4096  }
  0x7b   : > { %3249 = vsyncadd (%p3771_p0), %s192_s27, 4294963200  ;;  %p3772_p2 = scmp.eq.s32.totalorder %s3328_s16, 0 }
  0x7d   : > { %3251 = dma.done.wait (%p3772_p2), [#allocation6], 12640   ;;  %p3773_p7 = pmov %p3772_p2 }
  0x7e   : > { %v3056_v0 = vld [vmem:[#allocation5 + $0x80] ss:$8 sps:$4 sm:$0xff]   ;;  %v3058_v2 = vld [vmem:[#allocation5 + $0x90] ss:$8 sps:$4 sm:$0xff]   ;;  %vm776_vm0 = vcmask 523264   ;;  %vm946_vm1 = vcmask 261120  }
  0x7f   : > { %3253 = vsyncadd (%p3773_p7), [#allocation6], 4294954656  ;;  %v3057_v1 = vld [vmem:[#allocation5] ss:$8 sps:$4 sm:$0xff]   ;;  %2617 = vmatprep.subr.bf16.mxu0 %v3056_v0  ;;  %v3059_v3 = vld [vmem:[#allocation5 + $0x10] ss:$8 sps:$4 sm:$0xff]  }
  0x80   : > { %2618 = vmatpush3.bf16.msra.mxu0 %v3057_v1  ;;  %v3060_v4 = vld [vmem:[#allocation5 + $0xa0] ss:$8 sps:$4 sm:$0xff]   ;;  %v3062_v6 = vld [vmem:[#allocation5 + $0xb0] ss:$8 sps:$4 sm:$0xff]   ;;  %vm1288_vm2 = vcmask 1043456   ;;  %vm1108_vm3 = vcmask 130048  }
  0x81   : > { %2619 = vmatprep.subr.bf16.mxu0 %v3058_v2  ;;  %v3061_v5 = vld [vmem:[#allocation5 + $0x20] ss:$8 sps:$4 sm:$0xff]   ;;  %v3063_v7 = vld [vmem:[#allocation5 + $0x30] ss:$8 sps:$4 sm:$0xff]   ;;  %vm1263_vm4 = vcmask 64512   ;;  %s3630_s23 = scalar_lea.vmem [#allocation8], %s2468_s20 }
  0x82   : > { %v3064_v8 = vld [vmem:[#allocation5 + $0xc0] ss:$8 sps:$4 sm:$0xff]   ;;  %v3066_v10 = vld [vmem:[#allocation5 + $0xd0] ss:$8 sps:$4 sm:$0xff]   ;;  %s2340_s26 = scalar_lea.sflag [#allocation4], %s3476_s19  ;;  %p3774_p8 = scmp.ne.s32.totalorder %s3765_s24, 0 }
  0x83   : > { %v3065_v9 = vld [vmem:[#allocation5 + $0x40] ss:$8 sps:$4 sm:$0xff]   ;;  %v242_v12 = vld [vmem:[%s3482_s30 + $0x18] sm:$0xff]  ;;  %v241_v20 = vld [vmem:[%s3482_s30 + $0x10] sm:$0xff]  ;;  %s2601_s8 = sshll.u32 (%p3774_p8), %s3328_s16, 4 }
  0x84   : > { %2620 = vmatpush3.bf16.msra.mxu0 %v3059_v3  ;;  %v240_v11 = vld [vmem:[%s3482_s30 + $0x8] sm:$0xff]  ;;  %v3067_v14 = vld [vmem:[#allocation5 + $0x50] ss:$8 sps:$4 sm:$0xff]   ;;  %v239_v19 = vld [vmem:[%s3482_s30] sm:$0xff]  ;;  %s2348_s9 = ssub.s32 (%p3774_p8), 63, %s2601_s8 }
  0x85   : > { %2621 = vmatprep.subr.bf16.mxu0 %v3060_v4  ;;  %v305_v13 = vpack.c.bf16 %v242_v12, %v240_v11  ;;  %v3068_v15 = vld [vmem:[#allocation5 + $0xe0] ss:$8 sps:$4 sm:$0xff]   ;;  %v3070_v17 = vld [vmem:[#allocation5 + $0xf0] ss:$8 sps:$4 sm:$0xff]   ;;  %v304_v25 = vpack.c.bf16 %v241_v20, %v239_v19  ;;  %p2349_p9 = scmp.lt.s32.totalorder (%p3774_p8), %s2348_s9, 16 }
  0x86   : > { %v3069_v16 = vld [vmem:[#allocation5 + $0x60] ss:$8 sps:$4 sm:$0xff]   ;;  %v3071_v18 = vld [vmem:[#allocation5 + $0x70] ss:$8 sps:$4 sm:$0xff]  }
  0x87   : > { %454 = vmatprep.mubr.bf16.mxu0 %v305_v13  ;;  %v244_v21 = vld [vmem:[%s3482_s30 + $0x28] sm:$0xff]  ;;  %v246_v23 = vld [vmem:[%s3482_s30 + $0x38] sm:$0xff]  ;;  %v243_v28 = vld [vmem:[%s3482_s30 + $0x20] sm:$0xff] }
  0x88   : > { %2622 = vmatpush3.bf16.msra.mxu0 %v3061_v5  ;;  %v3072_v22 = vld [vmem:[#allocation5 + $0x100] ss:$8 sps:$4 sm:$0xff]   ;;  %v3073_v24 = vld [vmem:[#allocation5 + $0x110] ss:$8 sps:$4 sm:$0xff]   ;;  %v307_v26 = vpack.c.bf16 %v246_v23, %v244_v21 }
  0x89   : > { %2623 = vmatprep.subr.bf16.mxu0 %v3062_v6  ;;  %2969 = vmatprep.subr.bf16.mxu1 %v3072_v22  ;;  %v3074_v27 = vld [vmem:[#allocation5 + $0x120] ss:$8 sps:$4 sm:$0xff]   ;;  %v245_v29 = vld [vmem:[%s3482_s30 + $0x30] sm:$0xff]  ;;  %v250_v31 = vld [vmem:[%s3482_s30 + $0x58] sm:$0xff] }
  0x8a   : > { %2977 = vmatpush3.bf16.msra.mxu1 %v3072_v22  ;;  %v248_v30 = vld [vmem:[%s3482_s30 + $0x48] sm:$0xff]  ;;  %v3075_v32 = vld [vmem:[#allocation5 + $0x130] ss:$8 sps:$4 sm:$0xff]   ;;  %v306_v33 = vpack.c.bf16 %v245_v29, %v243_v28  ;;  %v247_v36 = vld [vmem:[%s3482_s30 + $0x40] sm:$0xff] }
  0x8b   : > { %2970 = vmatprep.subr.bf16.mxu1 %v3073_v24  ;;  %v309_v34 = vpack.c.bf16 %v250_v31, %v248_v30  ;;  %v3076_v35 = vld [vmem:[#allocation5 + $0x140] ss:$8 sps:$4 sm:$0xff]   ;;  %v249_v37 = vld [vmem:[%s3482_s30 + $0x50] sm:$0xff]  ;;  %v254_v39 = vld [vmem:[%s3482_s30 + $0x78] sm:$0xff] }
  0x8c   : > { %2624 = vmatpush3.bf16.msra.mxu0 %v3063_v7  ;;  %v252_v38 = vld [vmem:[%s3482_s30 + $0x68] sm:$0xff]  ;;  %v3077_v40 = vld [vmem:[#allocation5 + $0x150] ss:$8 sps:$4 sm:$0xff]   ;;  %v308_v41 = vpack.c.bf16 %v249_v37, %v247_v36  ;;  %v251_v43 = vld [vmem:[%s3482_s30 + $0x60] sm:$0xff] }
  0x8d   : > { %2625 = vmatprep.subr.bf16.mxu0 %v3064_v8  ;;  %v311_v42 = vpack.c.bf16 %v254_v39, %v252_v38  ;;  %v253_v44 = vld [vmem:[%s3482_s30 + $0x70] sm:$0xff]  ;;  %v256_v45 = vld [vmem:[%s3482_s30 + $0x88] sm:$0xff]  ;;  %v258_v46 = vld [vmem:[%s3482_s30 + $0x98] sm:$0xff] }
  0x8e   : > { %2978 = vmatpush3.bf16.msra.mxu1 %v3073_v24  ;;  %v310_v47 = vpack.c.bf16 %v253_v44, %v251_v43  ;;  %v313_v48 = vpack.c.bf16 %v258_v46, %v256_v45  ;;  %v255_v49 = vld [vmem:[%s3482_s30 + $0x80] sm:$0xff]  ;;  %v257_v50 = vld [vmem:[%s3482_s30 + $0x90] sm:$0xff]  ;;  %v260_v51 = vld [vmem:[%s3482_s30 + $0xa8] sm:$0xff] }
  0x8f   : > { %2971 = vmatprep.subr.bf16.mxu1 %v3074_v27  ;;  %v262_v52 = vld [vmem:[%s3482_s30 + $0xb8] sm:$0xff]  ;;  %v312_v53 = vpack.c.bf16 %v257_v50, %v255_v49  ;;  %v259_v55 = vld [vmem:[%s3482_s30 + $0xa0] sm:$0xff]  ;;  %v261_v56 = vld [vmem:[%s3482_s30 + $0xb0] sm:$0xff] }
  0x90   : > { %2626 = vmatpush3.bf16.msra.mxu0 %v3065_v9  ;;  %v315_v54 = vpack.c.bf16 %v262_v52, %v260_v51  ;;  %v264_v57 = vld [vmem:[%s3482_s30 + $0xc8] sm:$0xff]  ;;  %v266_v58 = vld [vmem:[%s3482_s30 + $0xd8] sm:$0xff]  ;;  %v314_v59 = vpack.c.bf16 %v261_v56, %v259_v55  ;;  %v263_v61 = vld [vmem:[%s3482_s30 + $0xc0] sm:$0xff] }
  0x91   : > { %2627 = vmatprep.subr.bf16.mxu0 %v3066_v10  ;;  %v317_v60 = vpack.c.bf16 %v266_v58, %v264_v57  ;;  %v265_v62 = vld [vmem:[%s3482_s30 + $0xd0] sm:$0xff]  ;;  %v268_v63 = vld [vmem:[%s3482_s30 + $0xe8] sm:$0xff]  ;;  %v270_v0 = vld [vmem:[%s3482_s30 + $0xf8] sm:$0xff] }
  0x92   : > { %2979 = vmatpush3.bf16.msra.mxu1 %v3074_v27  ;;  %v316_v1 = vpack.c.bf16 %v265_v62, %v263_v61  ;;  %v319_v2 = vpack.c.bf16 %v270_v0, %v268_v63  ;;  %v267_v3 = vld [vmem:[%s3482_s30 + $0xe0] sm:$0xff]  ;;  %v269_v4 = vld [vmem:[%s3482_s30 + $0xf0] sm:$0xff] }
  0x93   : > { %2972 = vmatprep.subr.bf16.mxu1 %v3075_v32  ;;  %v318_v5 = vpack.c.bf16 %v269_v4, %v267_v3  ;;  %v3078_v6 = vld [vmem:[#allocation5 + $0x160] ss:$8 sps:$4 sm:$0xff]   ;;  %v3079_v7 = vld [vmem:[#allocation5 + $0x170] ss:$8 sps:$4 sm:$0xff]  }
  0x94   : > { %2628 = vmatpush3.bf16.msra.mxu0 %v3067_v14  ;;  %v3524_v8 = vld [vmem:[#allocation5 + $0x180] ss:$8 sps:$4 sm:$0xff]  }
  0x95   : > { %2629 = vmatprep.subr.bf16.mxu0 %v3068_v15  ;;  %v3527_v10 = vld [vmem:[#allocation7] ss:$0 sm:$0xff] }
  0x96   : > { %2980 = vmatpush3.bf16.msra.mxu1 %v3075_v32 }
  0x97   : > { %2973 = vmatprep.subr.bf16.mxu1 %v3076_v35 }
  0x98   : > { %2630 = vmatpush3.bf16.msra.mxu0 %v3069_v16 }
  0x99   : > { %2631 = vmatprep.subr.bf16.mxu0 %v3070_v17 }
  0x9a   : > { %2981 = vmatpush3.bf16.msra.mxu1 %v3076_v35 }
  0x9b   : > { %2974 = vmatprep.subr.bf16.mxu1 %v3077_v40 }
  0x9c   : > { %2632 = vmatpush3.bf16.msra.mxu0 %v3071_v18 }
  0x9d   : > { %2777 = vmatprep.subr.bf16.mxu0 %v3072_v22 }
  0x9e   : > { %2982 = vmatpush3.bf16.msra.mxu1 %v3077_v40 }
  0x9f   : > { %455 = vmatmul.mubr.bf16.vlgmr.msra.gmra.mrb[0].mxu0 %v304_v25  ;;  %2975 = vmatprep.subr.bf16.mxu1 %v3078_v6 }
  0xa0   : > { %462 = vmatprep.mubr.bf16.mxu0 %v307_v26  ;;  %2778 = vmatpush3.bf16.msra.mxu0 %v3072_v22 }
  0xa1   : > { %2779 = vmatprep.subr.bf16.mxu0 %v3073_v24 }
  0xa2   : > { %2983 = vmatpush3.bf16.msra.mxu1 %v3078_v6 }
  0xa3   : > { %2976 = vmatprep.subr.bf16.mxu1 %v3079_v7 }
  0xa4   : > { %2780 = vmatpush3.bf16.msra.mxu0 %v3073_v24 }
  0xa5   : > { %2781 = vmatprep.subr.bf16.mxu0 %v3074_v27 }
  0xa6   : > { %2984 = vmatpush3.bf16.msra.mxu1 %v3079_v7 }
  0xa7   : > { %463 = vmatmul.mubr.bf16.gmra.mrb[4].mxu0 %v306_v33  ;;  %2809 = vmatprep.subr.bf16.mxu1 %v3524_v8 }
  0xa8   : > { %470 = vmatprep.mubr.bf16.mxu0 %v309_v34  ;;  %2782 = vmatpush3.bf16.msra.mxu0 %v3074_v27 }
  0xa9   : > { %2783 = vmatprep.subr.bf16.mxu0 %v3075_v32 }
  0xac   : > { %2784 = vmatpush3.bf16.msra.mxu0 %v3075_v32 }
  0xad   : > { %2785 = vmatprep.subr.bf16.mxu0 %v3076_v35 }
  0xaf   : > { %471 = vmatmul.mubr.bf16.gmra.mrb[8].mxu0 %v308_v41 }
  0xb0   : > { %478 = vmatprep.mubr.bf16.mxu0 %v311_v42  ;;  %2786 = vmatpush3.bf16.msra.mxu0 %v3076_v35 }
  0xb1   : > { %2787 = vmatprep.subr.bf16.mxu0 %v3077_v40 }
  0xb4   : > { %2788 = vmatpush3.bf16.msra.mxu0 %v3077_v40 }
  0xb5   : > { %2789 = vmatprep.subr.bf16.mxu0 %v3078_v6 }
  0xb7   : > { %479 = vmatmul.mubr.bf16.gmra.mrb[12].mxu0 %v310_v47 }
  0xb8   : > { %486 = vmatprep.mubr.bf16.mxu0 %v313_v48  ;;  %2790 = vmatpush3.bf16.msra.mxu0 %v3078_v6 }
  0xb9   : > { %2791 = vmatprep.subr.bf16.mxu0 %v3079_v7 }
  0xbc   : > { %2792 = vmatpush3.bf16.msra.mxu0 %v3079_v7 }
  0xbf   : > { %487 = vmatmul.mubr.bf16.gmra.mrb[16].mxu0 %v312_v53 }
  0xc0   : > { %494 = vmatprep.mubr.bf16.mxu0 %v315_v54 }
  0xc7   : > { %495 = vmatmul.mubr.bf16.gmra.mrb[20].mxu0 %v314_v59 }
  0xc8   : > { %502 = vmatprep.mubr.bf16.mxu0 %v317_v60 }
  0xcf   : > { %503 = vmatmul.mubr.bf16.gmra.mrb[24].mxu0 %v316_v1 }
  0xd0   : > { %510 = vmatprep.mubr.bf16.mxu0 %v319_v2 }
  0xd7   : > { %511 = vmatmul.mubr.bf16.gmra.mrb[28].mxu0 %v318_v5 }
 0x172   : > { %v2633_v9 = vpop.f32.mrb[0].mxu0 }
 0x173   : > { %v2634_v11 = vpop.f32.mrb[1].mxu0 }
 0x174   : > { %v2635_v12 = vadd.f32 %v2634_v11, %v2633_v9  ;;  %v2636_v13 = vpop.f32.mrb[2].mxu0 }
 0x175   : > { %v2637_v14 = vpop.f32.mrb[3].mxu0 }
 0x176   : > { %v457_v15 = vadd.f32 %v2635_v12, %v3527_v10  ;;  %v2638_v16 = vadd.f32 %v2637_v14, %v2636_v13 }
 0x178   : > { %v460_v17 = vadd.f32 %v2638_v16, %v3527_v10  ;;  %v519_v18 = vmax.f32 %v457_v15, 0.0 }
 0x17a   : > { %v520_v19 = vmax.f32 %v460_v17, 0.0  ;;  %v2639_v20 = vpop.f32.mrb[4].mxu0 }
 0x17b   : > { %v2640_v21 = vpop.f32.mrb[5].mxu0 }
 0x17c   : > { %v2641_v22 = vadd.f32 %v2640_v21, %v2639_v20  ;;  %v2642_v23 = vpop.f32.mrb[6].mxu0  ;;  %v553_v24 = vpack.c.bf16 %v520_v19, %v519_v18  ;;  %v3081_v18 = vld [vmem:[#allocation5 + $0x190] ss:$8 sps:$4 sm:$0xff]  }
 0x17d   : > { %v2643_v25 = vpop.f32.mrb[7].mxu0 }
 0x17e   : > { %v465_v26 = vadd.f32 %v2641_v22, %v3527_v10  ;;  %v2644_v27 = vadd.f32 %v2643_v25, %v2642_v23  ;;  %2793 = vmatprep.mubr.bf16.mxu0 %v553_v24 }
 0x180   : > { %v468_v28 = vadd.f32 %v2644_v27, %v3527_v10  ;;  %v521_v29 = vmax.f32 %v465_v26, 0.0 }
 0x182   : > { %v522_v30 = vmax.f32 %v468_v28, 0.0  ;;  %v2645_v31 = vpop.f32.mrb[8].mxu0 }
 0x183   : > { %v2646_v32 = vpop.f32.mrb[9].mxu0 }
 0x184   : > { %v554_v33 = vpack.c.bf16 %v522_v30, %v521_v29  ;;  %v2647_v34 = vadd.f32 %v2646_v32, %v2645_v31  ;;  %v2648_v35 = vpop.f32.mrb[10].mxu0 }
 0x185   : > { %v2649_v36 = vpop.f32.mrb[11].mxu0 }
 0x186   : > { %v473_v37 = vadd.f32 %v2647_v34, %v3527_v10  ;;  %v2650_v38 = vadd.f32 %v2649_v36, %v2648_v35  ;;  %2794 = vmatmul.mubr.bf16.vlgmr.msra.gmra.mrb[32].mxu0 %v554_v33  ;;  %v3082_v36 = vld [vmem:[#allocation5 + $0x1a0] ss:$8 sps:$4 sm:$0xff]  }
 0x188   : > { %v476_v39 = vadd.f32 %v2650_v38, %v3527_v10  ;;  %v523_v40 = vmax.f32 %v473_v37, 0.0  ;;  %v3083_v37 = vld [vmem:[#allocation5 + $0x1b0] ss:$8 sps:$4 sm:$0xff]   ;;  %v3084_v38 = vld [vmem:[#allocation5 + $0x1c0] ss:$8 sps:$4 sm:$0xff]  }
 0x189   : > { %2833 = vmatprep.subr.bf16.mxu0 %v3084_v38 }
 0x18a   : > { %v524_v41 = vmax.f32 %v476_v39, 0.0  ;;  %v2651_v42 = vpop.f32.mrb[12].mxu0  ;;  %2834 = vmatpush3.bf16.msra.mxu0 %v3084_v38  ;;  %v2489_v39 = vld [vmem:[#allocation7 + $0x2] ss:$0 sm:$0xff] }
 0x18b   : > { %v2652_v43 = vpop.f32.mrb[13].mxu0 }
 0x18c   : > { %v2653_v44 = vadd.f32 %v2652_v43, %v2651_v42  ;;  %v2654_v45 = vpop.f32.mrb[14].mxu0  ;;  %v555_v46 = vpack.c.bf16 %v524_v41, %v523_v40 }
 0x18d   : > { %v2655_v47 = vpop.f32.mrb[15].mxu0 }
 0x18e   : > { %v481_v48 = vadd.f32 %v2653_v44, %v3527_v10  ;;  %v2656_v49 = vadd.f32 %v2655_v47, %v2654_v45  ;;  %2797 = vmatprep.mubr.bf16.mxu0 %v555_v46 }
 0x190   : > { %v484_v50 = vadd.f32 %v2656_v49, %v3527_v10  ;;  %v525_v51 = vmax.f32 %v481_v48, 0.0 }
 0x192   : > { %v526_v52 = vmax.f32 %v484_v50, 0.0  ;;  %v2657_v53 = vpop.f32.mrb[16].mxu0 }
 0x193   : > { %v2658_v54 = vpop.f32.mrb[17].mxu0 }
 0x194   : > { %v2659_v55 = vadd.f32 %v2658_v54, %v2657_v53  ;;  %v2660_v56 = vpop.f32.mrb[18].mxu0  ;;  %v556_v57 = vpack.c.bf16 %v526_v52, %v525_v51 }
 0x195   : > { %v2661_v58 = vpop.f32.mrb[19].mxu0 }
 0x196   : > { %v2662_v59 = vadd.f32 %v2661_v58, %v2660_v56  ;;  %2798 = vmatmul.mubr.bf16.gmra.mrb[36].mxu0 %v556_v57  ;;  %v489_v60 = vadd.f32 %v2659_v55, %v3527_v10 }
 0x198   : > { %v492_v61 = vadd.f32 %v2662_v59, %v3527_v10  ;;  %v527_v63 = vmax.f32 %v489_v60, 0.0 }
 0x19a   : > { %v2663_v62 = vpop.f32.mrb[20].mxu0  ;;  %v528_v0 = vmax.f32 %v492_v61, 0.0 }
 0x19b   : > { %v2664_v1 = vpop.f32.mrb[21].mxu0 }
 0x19c   : > { %v2665_v2 = vadd.f32 %v2664_v1, %v2663_v62  ;;  %v2666_v3 = vpop.f32.mrb[22].mxu0  ;;  %v557_v4 = vpack.c.bf16 %v528_v0, %v527_v63 }
 0x19d   : > { %v2667_v5 = vpop.f32.mrb[23].mxu0 }
 0x19e   : > { %v497_v6 = vadd.f32 %v2665_v2, %v3527_v10  ;;  %v2668_v7 = vadd.f32 %v2667_v5, %v2666_v3  ;;  %2801 = vmatprep.mubr.bf16.mxu1 %v557_v4 }
 0x1a0   : > { %v500_v9 = vadd.f32 %v2668_v7, %v3527_v10  ;;  %v529_v11 = vmax.f32 %v497_v6, 0.0 }
 0x1a2   : > { %v530_v12 = vmax.f32 %v500_v9, 0.0  ;;  %v2669_v13 = vpop.f32.mrb[24].mxu0 }
 0x1a3   : > { %v2670_v14 = vpop.f32.mrb[25].mxu0 }
 0x1a4   : > { %v2671_v15 = vadd.f32 %v2670_v14, %v2669_v13  ;;  %v2672_v16 = vpop.f32.mrb[26].mxu0  ;;  %v558_v17 = vpack.c.bf16 %v530_v12, %v529_v11 }
 0x1a5   : > { %v2673_v19 = vpop.f32.mrb[27].mxu0 }
 0x1a6   : > { %v505_v20 = vadd.f32 %v2671_v15, %v3527_v10  ;;  %v2674_v21 = vadd.f32 %v2673_v19, %v2672_v16  ;;  %2802 = vmatmul.mubr.bf16.vlgmr.msra.gmra.mrb[0].mxu1 %v558_v17 }
 0x1a7   : > { %2810 = vmatpush3.bf16.msra.mxu1 %v3524_v8 }
 0x1a8   : > { %v508_v22 = vadd.f32 %v2674_v21, %v3527_v10  ;;  %2811 = vmatprep.subr.bf16.mxu1 %v3081_v18  ;;  %v531_v23 = vmax.f32 %v505_v20, 0.0 }
 0x1aa   : > { %v532_v24 = vmax.f32 %v508_v22, 0.0  ;;  %v2675_v25 = vpop.f32.mrb[28].mxu0 }
 0x1ab   : > { %v2676_v26 = vpop.f32.mrb[29].mxu0  ;;  %2812 = vmatpush3.bf16.msra.mxu1 %v3081_v18 }
 0x1ac   : > { %v2677_v27 = vadd.f32 %v2676_v26, %v2675_v25  ;;  %v2678_v28 = vpop.f32.mrb[30].mxu0  ;;  %v559_v29 = vpack.c.bf16 %v532_v24, %v531_v23  ;;  %2813 = vmatprep.subr.bf16.mxu1 %v3082_v36 }
 0x1ad   : > { %v2679_v30 = vpop.f32.mrb[31].mxu0 }
 0x1ae   : > { %v513_v31 = vadd.f32 %v2677_v27, %v3527_v10  ;;  %v2680_v32 = vadd.f32 %v2679_v30, %v2678_v28  ;;  %2805 = vmatprep.mubr.bf16.mxu1 %v559_v29 }
 0x1af   : > { %2814 = vmatpush3.bf16.msra.mxu1 %v3082_v36 }
 0x1b0   : > { %v516_v33 = vadd.f32 %v2680_v32, %v3527_v10  ;;  %v533_v34 = vmax.f32 %v513_v31, 0.0  ;;  %2815 = vmatprep.subr.bf16.mxu1 %v3083_v37 }
 0x1b2   : > { %v534_v8 = vmax.f32 %v516_v33, 0.0  ;;  %v3085_v33 = vld [vmem:[#allocation5 + $0x1d0] ss:$8 sps:$4 sm:$0xff]  }
 0x1b3   : > { %2816 = vmatpush3.bf16.msra.mxu1 %v3083_v37  ;;  %2835 = vmatprep.subr.bf16.mxu0 %v3085_v33 }
 0x1b4   : > { %v560_v35 = vpack.c.bf16 %v534_v8, %v533_v34  ;;  %2836 = vmatpush3.bf16.msra.mxu0 %v3085_v33  ;;  %v3086_v34 = vld [vmem:[#allocation5 + $0x1e0] ss:$8 sps:$4 sm:$0xff]   ;;  %v2498_v8 = vld [vmem:[#allocation7 + $0x4] ss:$0 sm:$0xff] }
 0x1b5   : > { %2853 = vmatprep.subr.bf16.mxu1 %v3086_v34 }
 0x1b6   : > { %2806 = vmatmul.mubr.bf16.gmra.mrb[4].mxu1 %v560_v35 }
 0x259   : > { %v2795_v40 = vpop.f32.mrb[32].mxu0 }
 0x25a   : > { %v658_v41 = vadd.f32 %v2795_v40, %v2489_v39  ;;  %v649_v42 = vpop.f32.mrb[33].mxu0 }
 0x25b   : > { %v650_v43 = vadd.f32 %v2489_v39, %v649_v42  ;;  %v2796_v44 = vpop.f32.mrb[34].mxu0 }
 0x25c   : > { %v661_v10 = vadd.f32 %v2796_v44, %v2489_v39  ;;  %v652_v45 = vpop.f32.mrb[35].mxu0  ;;  %v714_v47 = vmax.f32 %v658_v41, 0.0 }
 0x25d   : > { %v653_v46 = vadd.f32 %v2489_v39, %v652_v45  ;;  %v712_v49 = vmax.f32 %v650_v43, 0.0 }
 0x25e   : > { %v715_v48 = vmax.f32 %v661_v10, 0.0 }
 0x25f   : > { %v713_v50 = vmax.f32 %v653_v46, 0.0 }
 0x260   : > { %v739_v51 = vpack.c.bf16 %v715_v48, %v714_v47 }
 0x261   : > { %v738_v52 = vpack.c.bf16 %v713_v50, %v712_v49 }
 0x263   : > { %2817 = vmatprep.mubr.msk.bf16.mxu1 %vm776_vm0, %v738_v52 }
 0x264   : > { %2818 = vmatmul.mubr.msk.bf16.vlgmr.msra.gmra.mrb[8].mxu1 %vm776_vm0, %v739_v51 }
 0x265   : > { %2854 = vmatpush3.bf16.msra.mxu1 %v3086_v34 }
 0x269   : > { %v2799_v53 = vpop.f32.mrb[36].mxu0 }
 0x26a   : > { %v674_v54 = vadd.f32 %v2799_v53, %v2489_v39  ;;  %v665_v55 = vpop.f32.mrb[37].mxu0 }
 0x26b   : > { %v666_v56 = vadd.f32 %v2489_v39, %v665_v55  ;;  %v2800_v57 = vpop.f32.mrb[38].mxu0 }
 0x26c   : > { %v677_v58 = vadd.f32 %v2800_v57, %v2489_v39  ;;  %v668_v59 = vpop.f32.mrb[39].mxu0  ;;  %v718_v61 = vmax.f32 %v674_v54, 0.0 }
 0x26d   : > { %v669_v60 = vadd.f32 %v2489_v39, %v668_v59  ;;  %v716_v63 = vmax.f32 %v666_v56, 0.0 }
 0x26e   : > { %v719_v62 = vmax.f32 %v677_v58, 0.0 }
 0x26f   : > { %v717_v0 = vmax.f32 %v669_v60, 0.0 }
 0x270   : > { %v741_v1 = vpack.c.bf16 %v719_v62, %v718_v61 }
 0x271   : > { %v740_v2 = vpack.c.bf16 %v717_v0, %v716_v63 }
 0x273   : > { %2821 = vmatprep.mubr.msk.bf16.mxu1 %vm776_vm0, %v740_v2 }
 0x274   : > { %2822 = vmatmul.mubr.msk.bf16.gmra.mrb[12].mxu1 %vm776_vm0, %v741_v1 }
 0x279   : > { %v2803_v3 = vpop.f32.mrb[0].mxu1 }
 0x27a   : > { %v690_v4 = vadd.f32 %v2803_v3, %v2489_v39  ;;  %v681_v5 = vpop.f32.mrb[1].mxu1 }
 0x27b   : > { %v682_v6 = vadd.f32 %v2489_v39, %v681_v5  ;;  %v2804_v7 = vpop.f32.mrb[2].mxu1 }
 0x27c   : > { %v693_v9 = vadd.f32 %v2804_v7, %v2489_v39  ;;  %v684_v11 = vpop.f32.mrb[3].mxu1  ;;  %v722_v13 = vmax.f32 %v690_v4, 0.0 }
 0x27d   : > { %v685_v12 = vadd.f32 %v2489_v39, %v684_v11  ;;  %v720_v15 = vmax.f32 %v682_v6, 0.0 }
 0x27e   : > { %v723_v14 = vmax.f32 %v693_v9, 0.0 }
 0x27f   : > { %v721_v16 = vmax.f32 %v685_v12, 0.0 }
 0x280   : > { %v743_v17 = vpack.c.bf16 %v723_v14, %v722_v13 }
 0x281   : > { %v742_v18 = vpack.c.bf16 %v721_v16, %v720_v15 }
 0x283   : > { %2825 = vmatprep.mubr.msk.bf16.mxu1 %vm776_vm0, %v742_v18 }
 0x284   : > { %2826 = vmatmul.mubr.msk.bf16.gmra.mrb[16].mxu1 %vm776_vm0, %v743_v17 }
 0x289   : > { %v2807_v19 = vpop.f32.mrb[4].mxu1 }
 0x28a   : > { %v706_v20 = vadd.f32 %v2807_v19, %v2489_v39  ;;  %v697_v21 = vpop.f32.mrb[5].mxu1 }
 0x28b   : > { %v698_v22 = vadd.f32 %v2489_v39, %v697_v21  ;;  %v2808_v23 = vpop.f32.mrb[6].mxu1 }
 0x28c   : > { %v709_v24 = vadd.f32 %v2808_v23, %v2489_v39  ;;  %v700_v25 = vpop.f32.mrb[7].mxu1  ;;  %v726_v27 = vmax.f32 %v706_v20, 0.0 }
 0x28d   : > { %v701_v26 = vadd.f32 %v2489_v39, %v700_v25  ;;  %v724_v29 = vmax.f32 %v698_v22, 0.0 }
 0x28e   : > { %v727_v28 = vmax.f32 %v709_v24, 0.0 }
 0x28f   : > { %v725_v30 = vmax.f32 %v701_v26, 0.0 }
 0x290   : > { %v745_v31 = vpack.c.bf16 %v727_v28, %v726_v27  ;;  %v1246_v28 = vld [vmem:[#allocation5 + $0x1f0] sm:$0xf] }
 0x291   : > { %v744_v32 = vpack.c.bf16 %v725_v30, %v724_v29  ;;  %2985 = vmatprep.subr.msk.bf16.mxu0 %vm1288_vm2, %v1246_v28  ;;  %v1290_v29 = vsel %vm1288_vm2, %v1246_v28, 0  ;;  %v2511_v30 = vld [vmem:[#allocation7 + $0x6] ss:$0 sm:$0xff] }
 0x293   : > { %2829 = vmatprep.mubr.msk.bf16.mxu1 %vm776_vm0, %v744_v32 }
 0x294   : > { %2830 = vmatmul.mubr.msk.bf16.gmra.mrb[20].mxu1 %vm776_vm0, %v745_v31 }
 0x337   : > { %v2819_v35 = vpop.f32.mrb[8].mxu1 }
 0x338   : > { %v844_v36 = vadd.f32 %v2819_v35, %v2498_v8  ;;  %v835_v37 = vpop.f32.mrb[9].mxu1 }
 0x339   : > { %v836_v38 = vadd.f32 %v2498_v8, %v835_v37  ;;  %v2820_v39 = vpop.f32.mrb[10].mxu1 }
 0x33a   : > { %v847_v40 = vadd.f32 %v2820_v39, %v2498_v8  ;;  %v838_v41 = vpop.f32.mrb[11].mxu1  ;;  %v900_v43 = vmax.f32 %v844_v36, 0.0 }
 0x33b   : > { %v839_v42 = vadd.f32 %v2498_v8, %v838_v41  ;;  %v898_v10 = vmax.f32 %v836_v38, 0.0 }
 0x33c   : > { %v901_v44 = vmax.f32 %v847_v40, 0.0 }
 0x33d   : > { %v899_v45 = vmax.f32 %v839_v42, 0.0 }
 0x33e   : > { %v921_v46 = vpack.c.bf16 %v901_v44, %v900_v43 }
 0x33f   : > { %v920_v47 = vpack.c.bf16 %v899_v45, %v898_v10 }
 0x341   : > { %2837 = vmatprep.mubr.msk.bf16.mxu0 %vm946_vm1, %v920_v47 }
 0x342   : > { %2838 = vmatmul.mubr.msk.bf16.vlgmr.msra.gmra.mrb[40].mxu0 %vm946_vm1, %v921_v46 }
 0x343   : > { %2872 = vmatpush3.bf16.msra.mxu0 %v1290_v29 }
 0x347   : > { %v2823_v48 = vpop.f32.mrb[12].mxu1 }
 0x348   : > { %v860_v49 = vadd.f32 %v2823_v48, %v2498_v8  ;;  %v851_v50 = vpop.f32.mrb[13].mxu1 }
 0x349   : > { %v852_v51 = vadd.f32 %v2498_v8, %v851_v50  ;;  %v2824_v52 = vpop.f32.mrb[14].mxu1 }
 0x34a   : > { %v863_v53 = vadd.f32 %v2824_v52, %v2498_v8  ;;  %v854_v54 = vpop.f32.mrb[15].mxu1  ;;  %v904_v56 = vmax.f32 %v860_v49, 0.0 }
 0x34b   : > { %v855_v55 = vadd.f32 %v2498_v8, %v854_v54  ;;  %v902_v58 = vmax.f32 %v852_v51, 0.0 }
 0x34c   : > { %v905_v57 = vmax.f32 %v863_v53, 0.0 }
 0x34d   : > { %v903_v59 = vmax.f32 %v855_v55, 0.0 }
 0x34e   : > { %v923_v60 = vpack.c.bf16 %v905_v57, %v904_v56 }
 0x34f   : > { %v922_v61 = vpack.c.bf16 %v903_v59, %v902_v58 }
 0x351   : > { %2841 = vmatprep.mubr.msk.bf16.mxu0 %vm946_vm1, %v922_v61 }
 0x352   : > { %2842 = vmatmul.mubr.msk.bf16.gmra.mrb[44].mxu0 %vm946_vm1, %v923_v60 }
 0x357   : > { %v2827_v62 = vpop.f32.mrb[16].mxu1 }
 0x358   : > { %v876_v63 = vadd.f32 %v2827_v62, %v2498_v8  ;;  %v867_v0 = vpop.f32.mrb[17].mxu1 }
 0x359   : > { %v868_v1 = vadd.f32 %v2498_v8, %v867_v0  ;;  %v2828_v2 = vpop.f32.mrb[18].mxu1 }
 0x35a   : > { %v879_v3 = vadd.f32 %v2828_v2, %v2498_v8  ;;  %v870_v4 = vpop.f32.mrb[19].mxu1  ;;  %v908_v6 = vmax.f32 %v876_v63, 0.0 }
 0x35b   : > { %v871_v5 = vadd.f32 %v2498_v8, %v870_v4  ;;  %v906_v9 = vmax.f32 %v868_v1, 0.0 }
 0x35c   : > { %v909_v7 = vmax.f32 %v879_v3, 0.0 }
 0x35d   : > { %v907_v11 = vmax.f32 %v871_v5, 0.0 }
 0x35e   : > { %v925_v12 = vpack.c.bf16 %v909_v7, %v908_v6 }
 0x35f   : > { %v924_v13 = vpack.c.bf16 %v907_v11, %v906_v9 }
 0x361   : > { %2845 = vmatprep.mubr.msk.bf16.mxu0 %vm946_vm1, %v924_v13 }
 0x362   : > { %2846 = vmatmul.mubr.msk.bf16.gmra.mrb[48].mxu0 %vm946_vm1, %v925_v12 }
 0x367   : > { %v2831_v14 = vpop.f32.mrb[20].mxu1 }
 0x368   : > { %v892_v15 = vadd.f32 %v2831_v14, %v2498_v8  ;;  %v883_v16 = vpop.f32.mrb[21].mxu1 }
 0x369   : > { %v884_v17 = vadd.f32 %v2498_v8, %v883_v16  ;;  %v2832_v18 = vpop.f32.mrb[22].mxu1 }
 0x36a   : > { %v895_v19 = vadd.f32 %v2832_v18, %v2498_v8  ;;  %v886_v20 = vpop.f32.mrb[23].mxu1  ;;  %v912_v22 = vmax.f32 %v892_v15, 0.0 }
 0x36b   : > { %v887_v21 = vadd.f32 %v2498_v8, %v886_v20  ;;  %v910_v24 = vmax.f32 %v884_v17, 0.0 }
 0x36c   : > { %v913_v23 = vmax.f32 %v895_v19, 0.0 }
 0x36d   : > { %v911_v25 = vmax.f32 %v887_v21, 0.0 }
 0x36e   : > { %v927_v26 = vpack.c.bf16 %v913_v23, %v912_v22  ;;  %v1405_v23 = vld [vmem:[#allocation5 + $0x200] sm:$0xf] }
 0x36f   : > { %v926_v27 = vpack.c.bf16 %v911_v25, %v910_v24  ;;  %2986 = vmatprep.subr.msk.bf16.mxu1 %vm1288_vm2, %v1405_v23  ;;  %v1447_v24 = vsel %vm1288_vm2, %v1405_v23, 0  ;;  %v2522_v25 = vld [vmem:[#allocation7 + $0x8] ss:$0 sm:$0xff] }
 0x371   : > { %2849 = vmatprep.mubr.msk.bf16.mxu0 %vm946_vm1, %v926_v27 }
 0x372   : > { %2850 = vmatmul.mubr.msk.bf16.gmra.mrb[52].mxu0 %vm946_vm1, %v927_v26 }
 0x415   : > { %v2839_v31 = vpop.f32.mrb[40].mxu0 }
 0x416   : > { %v1014_v32 = vadd.f32 %v2839_v31, %v2511_v30  ;;  %v1005_v33 = vpop.f32.mrb[41].mxu0 }
 0x417   : > { %v1006_v34 = vadd.f32 %v2511_v30, %v1005_v33  ;;  %v2840_v8 = vpop.f32.mrb[42].mxu0 }
 0x418   : > { %v1017_v35 = vadd.f32 %v2840_v8, %v2511_v30  ;;  %v1008_v36 = vpop.f32.mrb[43].mxu0  ;;  %v1070_v38 = vmax.f32 %v1014_v32, 0.0 }
 0x419   : > { %v1009_v37 = vadd.f32 %v2511_v30, %v1008_v36  ;;  %v1068_v40 = vmax.f32 %v1006_v34, 0.0 }
 0x41a   : > { %v1071_v39 = vmax.f32 %v1017_v35, 0.0 }
 0x41b   : > { %v1069_v41 = vmax.f32 %v1009_v37, 0.0 }
 0x41c   : > { %v1089_v42 = vpack.c.bf16 %v1071_v39, %v1070_v38 }
 0x41d   : > { %v1088_v43 = vpack.c.bf16 %v1069_v41, %v1068_v40 }
 0x41f   : > { %2855 = vmatprep.mubr.msk.bf16.mxu1 %vm1108_vm3, %v1088_v43 }
 0x420   : > { %2856 = vmatmul.mubr.msk.bf16.vlgmr.msra.gmra.mrb[24].mxu1 %vm1108_vm3, %v1089_v42 }
 0x421   : > { %2890 = vmatpush3.bf16.msra.mxu1 %v1447_v24 }
 0x425   : > { %v2843_v44 = vpop.f32.mrb[44].mxu0 }
 0x426   : > { %v1030_v10 = vadd.f32 %v2843_v44, %v2511_v30  ;;  %v1021_v45 = vpop.f32.mrb[45].mxu0 }
 0x427   : > { %v1022_v46 = vadd.f32 %v2511_v30, %v1021_v45  ;;  %v2844_v47 = vpop.f32.mrb[46].mxu0 }
 0x428   : > { %v1033_v48 = vadd.f32 %v2844_v47, %v2511_v30  ;;  %v1024_v49 = vpop.f32.mrb[47].mxu0  ;;  %v1074_v51 = vmax.f32 %v1030_v10, 0.0 }
 0x429   : > { %v1025_v50 = vadd.f32 %v2511_v30, %v1024_v49  ;;  %v1072_v53 = vmax.f32 %v1022_v46, 0.0 }
 0x42a   : > { %v1075_v52 = vmax.f32 %v1033_v48, 0.0 }
 0x42b   : > { %v1073_v54 = vmax.f32 %v1025_v50, 0.0 }
 0x42c   : > { %v1091_v55 = vpack.c.bf16 %v1075_v52, %v1074_v51 }
 0x42d   : > { %v1090_v56 = vpack.c.bf16 %v1073_v54, %v1072_v53 }
 0x42f   : > { %2859 = vmatprep.mubr.msk.bf16.mxu1 %vm1108_vm3, %v1090_v56 }
 0x430   : > { %2860 = vmatmul.mubr.msk.bf16.gmra.mrb[28].mxu1 %vm1108_vm3, %v1091_v55 }
 0x435   : > { %v2847_v57 = vpop.f32.mrb[48].mxu0 }
 0x436   : > { %v1046_v58 = vadd.f32 %v2847_v57, %v2511_v30  ;;  %v1037_v59 = vpop.f32.mrb[49].mxu0 }
 0x437   : > { %v1038_v60 = vadd.f32 %v2511_v30, %v1037_v59  ;;  %v2848_v61 = vpop.f32.mrb[50].mxu0 }
 0x438   : > { %v1049_v62 = vadd.f32 %v2848_v61, %v2511_v30  ;;  %v1040_v63 = vpop.f32.mrb[51].mxu0  ;;  %v1078_v1 = vmax.f32 %v1046_v58, 0.0 }
 0x439   : > { %v1041_v0 = vadd.f32 %v2511_v30, %v1040_v63  ;;  %v1076_v3 = vmax.f32 %v1038_v60, 0.0 }
 0x43a   : > { %v1079_v2 = vmax.f32 %v1049_v62, 0.0 }
 0x43b   : > { %v1077_v4 = vmax.f32 %v1041_v0, 0.0 }
 0x43c   : > { %v1093_v5 = vpack.c.bf16 %v1079_v2, %v1078_v1 }
 0x43d   : > { %v1092_v6 = vpack.c.bf16 %v1077_v4, %v1076_v3 }
 0x43f   : > { %2863 = vmatprep.mubr.msk.bf16.mxu1 %vm1108_vm3, %v1092_v6 }
 0x440   : > { %2864 = vmatmul.mubr.msk.bf16.gmra.mrb[32].mxu1 %vm1108_vm3, %v1093_v5 }
 0x445   : > { %v2851_v7 = vpop.f32.mrb[52].mxu0 }
 0x446   : > { %v1062_v9 = vadd.f32 %v2851_v7, %v2511_v30  ;;  %v1053_v11 = vpop.f32.mrb[53].mxu0 }
 0x447   : > { %v1054_v12 = vadd.f32 %v2511_v30, %v1053_v11  ;;  %v2852_v13 = vpop.f32.mrb[54].mxu0 }
 0x448   : > { %v1065_v14 = vadd.f32 %v2852_v13, %v2511_v30  ;;  %v1056_v15 = vpop.f32.mrb[55].mxu0  ;;  %v1082_v17 = vmax.f32 %v1062_v9, 0.0 }
 0x449   : > { %v1057_v16 = vadd.f32 %v2511_v30, %v1056_v15  ;;  %v1080_v19 = vmax.f32 %v1054_v12, 0.0 }
 0x44a   : > { %v1083_v18 = vmax.f32 %v1065_v14, 0.0 }
 0x44b   : > { %v1081_v20 = vmax.f32 %v1057_v16, 0.0 }
 0x44c   : > { %v1095_v21 = vpack.c.bf16 %v1083_v18, %v1082_v17  ;;  %v3087_v18 = vld [vmem:[#allocation5 + $0x210] ss:$8 sps:$4 sm:$0xff]  }
 0x44d   : > { %v1094_v22 = vpack.c.bf16 %v1081_v20, %v1080_v19  ;;  %2907 = vmatprep.subr.bf16.mxu0 %v3087_v18  ;;  %v2532_v19 = vld [vmem:[#allocation7 + $0xa] ss:$0 sm:$0xff] }
 0x44f   : > { %2867 = vmatprep.mubr.msk.bf16.mxu1 %vm1108_vm3, %v1094_v22 }
 0x450   : > { %2868 = vmatmul.mubr.msk.bf16.gmra.mrb[36].mxu1 %vm1108_vm3, %v1095_v21 }
 0x4f3   : > { %v2857_v26 = vpop.f32.mrb[24].mxu1 }
 0x4f4   : > { %v1176_v27 = vadd.f32 %v2857_v26, %v2522_v25  ;;  %v1167_v28 = vpop.f32.mrb[25].mxu1 }
 0x4f5   : > { %v1168_v29 = vadd.f32 %v2522_v25, %v1167_v28  ;;  %v2858_v30 = vpop.f32.mrb[26].mxu1 }
 0x4f6   : > { %v1179_v31 = vadd.f32 %v2858_v30, %v2522_v25  ;;  %v1170_v32 = vpop.f32.mrb[27].mxu1  ;;  %v1232_v34 = vmax.f32 %v1176_v27, 0.0 }
 0x4f7   : > { %v1171_v33 = vadd.f32 %v2522_v25, %v1170_v32  ;;  %v1230_v35 = vmax.f32 %v1168_v29, 0.0 }
 0x4f8   : > { %v1233_v8 = vmax.f32 %v1179_v31, 0.0 }
 0x4f9   : > { %v1231_v36 = vmax.f32 %v1171_v33, 0.0 }
 0x4fa   : > { %v1250_v37 = vpack.c.bf16 %v1233_v8, %v1232_v34 }
 0x4fb   : > { %v1249_v38 = vpack.c.bf16 %v1231_v36, %v1230_v35 }
 0x4fd   : > { %2873 = vmatprep.mubr.msk.bf16.mxu0 %vm1263_vm4, %v1249_v38 }
 0x4fe   : > { %2874 = vmatmul.mubr.msk.bf16.vlgmr.msra.gmra.mrb[56].mxu0 %vm1263_vm4, %v1250_v37 }
 0x4ff   : > { %2908 = vmatpush3.bf16.msra.mxu0 %v3087_v18 }
 0x503   : > { %v2861_v39 = vpop.f32.mrb[28].mxu1 }
 0x504   : > { %v1192_v40 = vadd.f32 %v2861_v39, %v2522_v25  ;;  %v1183_v41 = vpop.f32.mrb[29].mxu1 }
 0x505   : > { %v1184_v42 = vadd.f32 %v2522_v25, %v1183_v41  ;;  %v2862_v43 = vpop.f32.mrb[30].mxu1 }
 0x506   : > { %v1195_v44 = vadd.f32 %v2862_v43, %v2522_v25  ;;  %v1186_v10 = vpop.f32.mrb[31].mxu1  ;;  %v1236_v46 = vmax.f32 %v1192_v40, 0.0 }
 0x507   : > { %v1187_v45 = vadd.f32 %v2522_v25, %v1186_v10  ;;  %v1234_v48 = vmax.f32 %v1184_v42, 0.0 }
 0x508   : > { %v1237_v47 = vmax.f32 %v1195_v44, 0.0 }
 0x509   : > { %v1235_v49 = vmax.f32 %v1187_v45, 0.0 }
 0x50a   : > { %v1252_v50 = vpack.c.bf16 %v1237_v47, %v1236_v46 }
 0x50b   : > { %v1251_v51 = vpack.c.bf16 %v1235_v49, %v1234_v48 }
 0x50d   : > { %2877 = vmatprep.mubr.msk.bf16.mxu0 %vm1263_vm4, %v1251_v51 }
 0x50e   : > { %2878 = vmatmul.mubr.msk.bf16.gmra.mrb[60].mxu0 %vm1263_vm4, %v1252_v50 }
 0x513   : > { %v2865_v52 = vpop.f32.mrb[32].mxu1 }
 0x514   : > { %v1208_v53 = vadd.f32 %v2865_v52, %v2522_v25  ;;  %v1199_v54 = vpop.f32.mrb[33].mxu1 }
 0x515   : > { %v1200_v55 = vadd.f32 %v2522_v25, %v1199_v54  ;;  %v2866_v56 = vpop.f32.mrb[34].mxu1 }
 0x516   : > { %v1211_v57 = vadd.f32 %v2866_v56, %v2522_v25  ;;  %v1202_v58 = vpop.f32.mrb[35].mxu1  ;;  %v1240_v60 = vmax.f32 %v1208_v53, 0.0 }
 0x517   : > { %v1203_v59 = vadd.f32 %v2522_v25, %v1202_v58  ;;  %v1238_v62 = vmax.f32 %v1200_v55, 0.0 }
 0x518   : > { %v1241_v61 = vmax.f32 %v1211_v57, 0.0 }
 0x519   : > { %v1239_v63 = vmax.f32 %v1203_v59, 0.0 }
 0x51a   : > { %v1254_v0 = vpack.c.bf16 %v1241_v61, %v1240_v60 }
 0x51b   : > { %v1253_v1 = vpack.c.bf16 %v1239_v63, %v1238_v62 }
 0x51d   : > { %2881 = vmatprep.mubr.msk.bf16.mxu0 %vm1263_vm4, %v1253_v1 }
 0x51e   : > { %2882 = vmatmul.mubr.msk.bf16.gmra.mrb[64].mxu0 %vm1263_vm4, %v1254_v0 }
 0x523   : > { %v2869_v2 = vpop.f32.mrb[36].mxu1 }
 0x524   : > { %v1224_v3 = vadd.f32 %v2869_v2, %v2522_v25  ;;  %v1215_v4 = vpop.f32.mrb[37].mxu1 }
 0x525   : > { %v1216_v5 = vadd.f32 %v2522_v25, %v1215_v4  ;;  %v2870_v6 = vpop.f32.mrb[38].mxu1 }
 0x526   : > { %v1227_v7 = vadd.f32 %v2870_v6, %v2522_v25  ;;  %v1218_v9 = vpop.f32.mrb[39].mxu1  ;;  %v1244_v12 = vmax.f32 %v1224_v3, 0.0 }
 0x527   : > { %v1219_v11 = vadd.f32 %v2522_v25, %v1218_v9  ;;  %v1242_v14 = vmax.f32 %v1216_v5, 0.0 }
 0x528   : > { %v1245_v13 = vmax.f32 %v1227_v7, 0.0 }
 0x529   : > { %v1243_v15 = vmax.f32 %v1219_v11, 0.0 }
 0x52a   : > { %v1256_v16 = vpack.c.bf16 %v1245_v13, %v1244_v12  ;;  %v3088_v12 = vld [vmem:[#allocation5 + $0x220] ss:$8 sps:$4 sm:$0xff]   ;;  %v3089_v13 = vld [vmem:[#allocation5 + $0x230] ss:$8 sps:$4 sm:$0xff]  }
 0x52b   : > { %v1255_v17 = vpack.c.bf16 %v1243_v15, %v1242_v14  ;;  %2925 = vmatprep.subr.bf16.mxu1 %v3088_v12  ;;  %v2541_v14 = vld [vmem:[#allocation7 + $0xc] ss:$0 sm:$0xff] }
 0x52d   : > { %2885 = vmatprep.mubr.msk.bf16.mxu0 %vm1263_vm4, %v1255_v17 }
 0x52e   : > { %2886 = vmatmul.mubr.msk.bf16.gmra.mrb[68].mxu0 %vm1263_vm4, %v1256_v16 }
 0x5d1   : > { %v2875_v20 = vpop.f32.mrb[56].mxu0 }
 0x5d2   : > { %v1335_v21 = vadd.f32 %v2875_v20, %v2532_v19  ;;  %v1326_v22 = vpop.f32.mrb[57].mxu0 }
 0x5d3   : > { %v1327_v23 = vadd.f32 %v2532_v19, %v1326_v22  ;;  %v2876_v24 = vpop.f32.mrb[58].mxu0 }
 0x5d4   : > { %v1338_v25 = vadd.f32 %v2876_v24, %v2532_v19  ;;  %v1329_v26 = vpop.f32.mrb[59].mxu0  ;;  %v1391_v28 = vmax.f32 %v1335_v21, 0.0 }
 0x5d5   : > { %v1330_v27 = vadd.f32 %v2532_v19, %v1329_v26  ;;  %v1389_v30 = vmax.f32 %v1327_v23, 0.0 }
 0x5d6   : > { %v1392_v29 = vmax.f32 %v1338_v25, 0.0 }
 0x5d7   : > { %v1390_v31 = vmax.f32 %v1330_v27, 0.0 }
 0x5d8   : > { %v1409_v32 = vpack.c.bf16 %v1392_v29, %v1391_v28 }
 0x5d9   : > { %v1408_v33 = vpack.c.bf16 %v1390_v31, %v1389_v30 }
 0x5db   : > { %2891 = vmatprep.mubr.msk.bf16.mxu1 %vm1263_vm4, %v1408_v33 }
 0x5dc   : > { %2892 = vmatmul.mubr.msk.bf16.vlgmr.msra.gmra.mrb[40].mxu1 %vm1263_vm4, %v1409_v32 }
 0x5dd   : > { %2926 = vmatpush3.bf16.msra.mxu1 %v3088_v12 }
 0x5de   : > { %2927 = vmatprep.subr.bf16.mxu1 %v3089_v13 }
 0x5e1   : > { %v2879_v34 = vpop.f32.mrb[60].mxu0  ;;  %2928 = vmatpush3.bf16.msra.mxu1 %v3089_v13 }
 0x5e2   : > { %v1351_v8 = vadd.f32 %v2879_v34, %v2532_v19  ;;  %v1342_v35 = vpop.f32.mrb[61].mxu0 }
 0x5e3   : > { %v1343_v36 = vadd.f32 %v2532_v19, %v1342_v35  ;;  %v2880_v37 = vpop.f32.mrb[62].mxu0 }
 0x5e4   : > { %v1354_v38 = vadd.f32 %v2880_v37, %v2532_v19  ;;  %v1345_v39 = vpop.f32.mrb[63].mxu0  ;;  %v1395_v41 = vmax.f32 %v1351_v8, 0.0 }
 0x5e5   : > { %v1346_v40 = vadd.f32 %v2532_v19, %v1345_v39  ;;  %v1393_v43 = vmax.f32 %v1343_v36, 0.0 }
 0x5e6   : > { %v1396_v42 = vmax.f32 %v1354_v38, 0.0 }
 0x5e7   : > { %v1394_v44 = vmax.f32 %v1346_v40, 0.0 }
 0x5e8   : > { %v1411_v10 = vpack.c.bf16 %v1396_v42, %v1395_v41 }
 0x5e9   : > { %v1410_v45 = vpack.c.bf16 %v1394_v44, %v1393_v43 }
 0x5eb   : > { %2895 = vmatprep.mubr.msk.bf16.mxu1 %vm1263_vm4, %v1410_v45 }
 0x5ec   : > { %2896 = vmatmul.mubr.msk.bf16.gmra.mrb[44].mxu1 %vm1263_vm4, %v1411_v10 }
 0x5f1   : > { %v2883_v46 = vpop.f32.mrb[64].mxu0 }
 0x5f2   : > { %v1367_v47 = vadd.f32 %v2883_v46, %v2532_v19  ;;  %v1358_v48 = vpop.f32.mrb[65].mxu0 }
 0x5f3   : > { %v1359_v49 = vadd.f32 %v2532_v19, %v1358_v48  ;;  %v2884_v50 = vpop.f32.mrb[66].mxu0 }
 0x5f4   : > { %v1370_v51 = vadd.f32 %v2884_v50, %v2532_v19  ;;  %v1361_v52 = vpop.f32.mrb[67].mxu0  ;;  %v1399_v54 = vmax.f32 %v1367_v47, 0.0 }
 0x5f5   : > { %v1362_v53 = vadd.f32 %v2532_v19, %v1361_v52  ;;  %v1397_v56 = vmax.f32 %v1359_v49, 0.0 }
 0x5f6   : > { %v1400_v55 = vmax.f32 %v1370_v51, 0.0 }
 0x5f7   : > { %v1398_v57 = vmax.f32 %v1362_v53, 0.0 }
 0x5f8   : > { %v1413_v58 = vpack.c.bf16 %v1400_v55, %v1399_v54 }
 0x5f9   : > { %v1412_v59 = vpack.c.bf16 %v1398_v57, %v1397_v56 }
 0x5fb   : > { %2899 = vmatprep.mubr.msk.bf16.mxu1 %vm1263_vm4, %v1412_v59 }
 0x5fc   : > { %2900 = vmatmul.mubr.msk.bf16.gmra.mrb[48].mxu1 %vm1263_vm4, %v1413_v58 }
 0x601   : > { %v2887_v60 = vpop.f32.mrb[68].mxu0 }
 0x602   : > { %v1383_v61 = vadd.f32 %v2887_v60, %v2532_v19  ;;  %v1374_v62 = vpop.f32.mrb[69].mxu0 }
 0x603   : > { %v1375_v63 = vadd.f32 %v2532_v19, %v1374_v62  ;;  %v2888_v0 = vpop.f32.mrb[70].mxu0 }
 0x604   : > { %v1386_v1 = vadd.f32 %v2888_v0, %v2532_v19  ;;  %v1377_v2 = vpop.f32.mrb[71].mxu0  ;;  %v1403_v4 = vmax.f32 %v1383_v61, 0.0 }
 0x605   : > { %v1378_v3 = vadd.f32 %v2532_v19, %v1377_v2  ;;  %v1401_v6 = vmax.f32 %v1375_v63, 0.0 }
 0x606   : > { %v1404_v5 = vmax.f32 %v1386_v1, 0.0 }
 0x607   : > { %v1402_v7 = vmax.f32 %v1378_v3, 0.0 }
 0x608   : > { %v1415_v9 = vpack.c.bf16 %v1404_v5, %v1403_v4  ;;  %v3090_v5 = vld [vmem:[#allocation5 + $0x240] ss:$8 sps:$4 sm:$0xff]  }
 0x609   : > { %v1414_v11 = vpack.c.bf16 %v1402_v7, %v1401_v6  ;;  %v3091_v6 = vld [vmem:[#allocation5 + $0x250] ss:$8 sps:$4 sm:$0xff]   ;;  %2945 = vmatprep.subr.bf16.mxu0 %v3090_v5  ;;  %v3092_v7 = vld [vmem:[#allocation5 + $0x260] ss:$8 sps:$4 sm:$0xff]  }
 0x60b   : > { %2903 = vmatprep.mubr.msk.bf16.mxu1 %vm1263_vm4, %v1414_v11 }
 0x60c   : > { %2904 = vmatmul.mubr.msk.bf16.gmra.mrb[52].mxu1 %vm1263_vm4, %v1415_v9  ;;  %v2550_v9 = vld [vmem:[#allocation7 + $0xe] ss:$0 sm:$0xff] }
 0x6af   : > { %v2893_v15 = vpop.f32.mrb[40].mxu1 }
 0x6b0   : > { %v1492_v16 = vadd.f32 %v2893_v15, %v2541_v14  ;;  %v1483_v17 = vpop.f32.mrb[41].mxu1 }
 0x6b1   : > { %v1484_v18 = vadd.f32 %v2541_v14, %v1483_v17  ;;  %v2894_v19 = vpop.f32.mrb[42].mxu1 }
 0x6b2   : > { %v1495_v20 = vadd.f32 %v2894_v19, %v2541_v14  ;;  %v1486_v21 = vpop.f32.mrb[43].mxu1  ;;  %v1548_v23 = vmax.f32 %v1492_v16, 0.0 }
 0x6b3   : > { %v1487_v22 = vadd.f32 %v2541_v14, %v1486_v21  ;;  %v1546_v25 = vmax.f32 %v1484_v18, 0.0 }
 0x6b4   : > { %v1549_v24 = vmax.f32 %v1495_v20, 0.0 }
 0x6b5   : > { %v1547_v26 = vmax.f32 %v1487_v22, 0.0 }
 0x6b6   : > { %v1567_v27 = vpack.c.bf16 %v1549_v24, %v1548_v23 }
 0x6b7   : > { %v1566_v28 = vpack.c.bf16 %v1547_v26, %v1546_v25 }
 0x6b9   : > { %2909 = vmatprep.mubr.msk.bf16.mxu0 %vm1108_vm3, %v1566_v28 }
 0x6ba   : > { %2910 = vmatmul.mubr.msk.bf16.vlgmr.msra.gmra.mrb[72].mxu0 %vm1108_vm3, %v1567_v27 }
 0x6bb   : > { %2946 = vmatpush3.bf16.msra.mxu0 %v3090_v5  ;;  %v3097_v5 = vld [vmem:[#allocation5 + $0x290] ss:$8 sps:$4 sm:$0xff]  }
 0x6bc   : > { %2947 = vmatprep.subr.bf16.mxu0 %v3091_v6 }
 0x6bf   : > { %v2897_v29 = vpop.f32.mrb[44].mxu1  ;;  %2948 = vmatpush3.bf16.msra.mxu0 %v3091_v6  ;;  %v3102_v6 = vld [vmem:[#allocation5 + $0x2a4] ss:$8 sps:$4 sm:$0xff]  }
 0x6c0   : > { %v1508_v30 = vadd.f32 %v2897_v29, %v2541_v14  ;;  %v1499_v31 = vpop.f32.mrb[45].mxu1  ;;  %2949 = vmatprep.subr.bf16.mxu0 %v3092_v7 }
 0x6c1   : > { %v1500_v32 = vadd.f32 %v2541_v14, %v1499_v31  ;;  %v2898_v33 = vpop.f32.mrb[46].mxu1 }
 0x6c2   : > { %v1511_v34 = vadd.f32 %v2898_v33, %v2541_v14  ;;  %v1502_v8 = vpop.f32.mrb[47].mxu1  ;;  %v1552_v36 = vmax.f32 %v1508_v30, 0.0 }
 0x6c3   : > { %v1503_v35 = vadd.f32 %v2541_v14, %v1502_v8  ;;  %v1550_v38 = vmax.f32 %v1500_v32, 0.0  ;;  %2950 = vmatpush3.bf16.msra.mxu0 %v3092_v7  ;;  %v3100_v7 = vld [vmem:[#allocation5 + $0x2a0] ss:$8 sps:$4 sm:$0xff]  }
 0x6c4   : > { %v1553_v37 = vmax.f32 %v1511_v34, 0.0 }
 0x6c5   : > { %v1551_v39 = vmax.f32 %v1503_v35, 0.0 }
 0x6c6   : > { %v1569_v40 = vpack.c.bf16 %v1553_v37, %v1552_v36 }
 0x6c7   : > { %v1568_v41 = vpack.c.bf16 %v1551_v39, %v1550_v38 }
 0x6c9   : > { %2913 = vmatprep.mubr.msk.bf16.mxu0 %vm1108_vm3, %v1568_v41 }
 0x6ca   : > { %2914 = vmatmul.mubr.msk.bf16.gmra.mrb[76].mxu0 %vm1108_vm3, %v1569_v40 }
 0x6cf   : > { %v2901_v42 = vpop.f32.mrb[48].mxu1 }
 0x6d0   : > { %v1524_v43 = vadd.f32 %v2901_v42, %v2541_v14  ;;  %v1515_v44 = vpop.f32.mrb[49].mxu1 }
 0x6d1   : > { %v1516_v10 = vadd.f32 %v2541_v14, %v1515_v44  ;;  %v2902_v45 = vpop.f32.mrb[50].mxu1 }
 0x6d2   : > { %v1527_v46 = vadd.f32 %v2902_v45, %v2541_v14  ;;  %v1518_v47 = vpop.f32.mrb[51].mxu1  ;;  %v1556_v49 = vmax.f32 %v1524_v43, 0.0 }
 0x6d3   : > { %v1519_v48 = vadd.f32 %v2541_v14, %v1518_v47  ;;  %v1554_v51 = vmax.f32 %v1516_v10, 0.0 }
 0x6d4   : > { %v1557_v50 = vmax.f32 %v1527_v46, 0.0 }
 0x6d5   : > { %v1555_v52 = vmax.f32 %v1519_v48, 0.0 }
 0x6d6   : > { %v1571_v53 = vpack.c.bf16 %v1557_v50, %v1556_v49 }
 0x6d7   : > { %v1570_v54 = vpack.c.bf16 %v1555_v52, %v1554_v51 }
 0x6d9   : > { %2917 = vmatprep.mubr.msk.bf16.mxu0 %vm1108_vm3, %v1570_v54 }
 0x6da   : > { %2918 = vmatmul.mubr.msk.bf16.gmra.mrb[80].mxu0 %vm1108_vm3, %v1571_v53 }
 0x6df   : > { %v2905_v55 = vpop.f32.mrb[52].mxu1 }
 0x6e0   : > { %v1540_v56 = vadd.f32 %v2905_v55, %v2541_v14  ;;  %v1531_v57 = vpop.f32.mrb[53].mxu1 }
 0x6e1   : > { %v1532_v58 = vadd.f32 %v2541_v14, %v1531_v57  ;;  %v2906_v59 = vpop.f32.mrb[54].mxu1 }
 0x6e2   : > { %v1543_v60 = vadd.f32 %v2906_v59, %v2541_v14  ;;  %v1534_v61 = vpop.f32.mrb[55].mxu1  ;;  %v1560_v63 = vmax.f32 %v1540_v56, 0.0 }
 0x6e3   : > { %v1535_v62 = vadd.f32 %v2541_v14, %v1534_v61  ;;  %v1558_v1 = vmax.f32 %v1532_v58, 0.0 }
 0x6e4   : > { %v1561_v0 = vmax.f32 %v1543_v60, 0.0 }
 0x6e5   : > { %v1559_v2 = vmax.f32 %v1535_v62, 0.0 }
 0x6e6   : > { %v1573_v3 = vpack.c.bf16 %v1561_v0, %v1560_v63 }
 0x6e7   : > { %v1572_v4 = vpack.c.bf16 %v1559_v2, %v1558_v1  ;;  %v3093_v1 = vld [vmem:[#allocation5 + $0x270] ss:$8 sps:$4 sm:$0xff]   ;;  %v3094_v2 = vld [vmem:[#allocation5 + $0x280] ss:$8 sps:$4 sm:$0xff]  }
 0x6e8   : > { %2951 = vmatprep.subr.bf16.mxu0 %v3093_v1 }
 0x6e9   : > { %2921 = vmatprep.mubr.msk.bf16.mxu0 %vm1108_vm3, %v1572_v4  ;;  %2952 = vmatpush3.bf16.msra.mxu0 %v3093_v1  ;;  %v3099_v4 = vld [vmem:[#allocation5 + $0x294] ss:$8 sps:$4 sm:$0xff]  }
 0x6ea   : > { %2922 = vmatmul.mubr.msk.bf16.gmra.mrb[84].mxu0 %vm1108_vm3, %v1573_v3  ;;  %v3096_v3 = vld [vmem:[#allocation5 + $0x284] ss:$8 sps:$4 sm:$0xff]  }
 0x6eb   : > { %2194 = vmatprep.subr.bf16.mxu1 %v3096_v3 }
 0x78d   : > { %v2911_v11 = vpop.f32.mrb[72].mxu0 }
 0x78e   : > { %v1653_v12 = vadd.f32 %v2911_v11, %v2550_v9  ;;  %v1644_v13 = vpop.f32.mrb[73].mxu0  ;;  %v3103_v11 = vld [vmem:[#allocation5 + $0x2b0] ss:$8 sps:$4 sm:$0xff]  }
 0x78f   : > { %v1645_v14 = vadd.f32 %v2550_v9, %v1644_v13  ;;  %v2912_v15 = vpop.f32.mrb[74].mxu0  ;;  %v3106_v13 = vld [vmem:[#allocation5 + $0x2c0] ss:$8 sps:$4 sm:$0xff]  }
 0x790   : > { %v1656_v16 = vadd.f32 %v2912_v15, %v2550_v9  ;;  %v1647_v17 = vpop.f32.mrb[75].mxu0  ;;  %v1709_v19 = vmax.f32 %v1653_v12, 0.0  ;;  %v3108_v12 = vld [vmem:[#allocation5 + $0x2c4] ss:$8 sps:$4 sm:$0xff]   ;;  %v3109_v15 = vld [vmem:[#allocation5 + $0x2d0] ss:$8 sps:$4 sm:$0xff]  }
 0x791   : > { %v1648_v18 = vadd.f32 %v2550_v9, %v1647_v17  ;;  %v1707_v21 = vmax.f32 %v1645_v14, 0.0  ;;  %v3111_v14 = vld [vmem:[#allocation5 + $0x2d4] ss:$8 sps:$4 sm:$0xff]  }
 0x792   : > { %v1710_v20 = vmax.f32 %v1656_v16, 0.0  ;;  %v2560_v16 = vld [vmem:[#allocation7 + $0x10] ss:$0 sm:$0xff] }
 0x793   : > { %v1708_v22 = vmax.f32 %v1648_v18, 0.0 }
 0x794   : > { %v1730_v23 = vpack.c.bf16 %v1710_v20, %v1709_v19 }
 0x795   : > { %v1729_v24 = vpack.c.bf16 %v1708_v22, %v1707_v21 }
 0x797   : > { %2929 = vmatprep.mubr.msk.bf16.mxu1 %vm946_vm1, %v1729_v24 }
 0x798   : > { %2930 = vmatmul.mubr.msk.bf16.vlgmr.msra.gmra.mrb[56].mxu1 %vm946_vm1, %v1730_v23 }
 0x799   : > { %2195 = vmatpush1.bf16.msra.mxu1 %v3094_v2 }
 0x79a   : > { %2196 = vmatprep.subr.bf16.mxu1 %v3099_v4 }
 0x79d   : > { %v2915_v25 = vpop.f32.mrb[76].mxu0  ;;  %2197 = vmatpush1.bf16.msra.mxu1 %v3097_v5 }
 0x79e   : > { %v1669_v26 = vadd.f32 %v2915_v25, %v2550_v9  ;;  %v1660_v27 = vpop.f32.mrb[77].mxu0  ;;  %2198 = vmatprep.subr.bf16.mxu1 %v3102_v6 }
 0x79f   : > { %v1661_v28 = vadd.f32 %v2550_v9, %v1660_v27  ;;  %v2916_v29 = vpop.f32.mrb[78].mxu0 }
 0x7a0   : > { %v1672_v30 = vadd.f32 %v2916_v29, %v2550_v9  ;;  %v1663_v31 = vpop.f32.mrb[79].mxu0  ;;  %v1713_v33 = vmax.f32 %v1669_v26, 0.0 }
 0x7a1   : > { %v1664_v32 = vadd.f32 %v2550_v9, %v1663_v31  ;;  %v1711_v8 = vmax.f32 %v1661_v28, 0.0  ;;  %2199 = vmatpush1.bf16.msra.mxu1 %v3100_v7  ;;  %v3114_v7 = vld [vmem:[#allocation5 + $0x2e4] ss:$8 sps:$4 sm:$0xff]  }
 0x7a2   : > { %v1714_v34 = vmax.f32 %v1672_v30, 0.0 }
 0x7a3   : > { %v1712_v35 = vmax.f32 %v1664_v32, 0.0 }
 0x7a4   : > { %v1732_v36 = vpack.c.bf16 %v1714_v34, %v1713_v33 }
 0x7a5   : > { %v1731_v37 = vpack.c.bf16 %v1712_v35, %v1711_v8 }
 0x7a7   : > { %2933 = vmatprep.mubr.msk.bf16.mxu1 %vm946_vm1, %v1731_v37 }
 0x7a8   : > { %2934 = vmatmul.mubr.msk.bf16.gmra.mrb[60].mxu1 %vm946_vm1, %v1732_v36 }
 0x7ad   : > { %v2919_v38 = vpop.f32.mrb[80].mxu0 }
 0x7ae   : > { %v1685_v39 = vadd.f32 %v2919_v38, %v2550_v9  ;;  %v1676_v40 = vpop.f32.mrb[81].mxu0 }
 0x7af   : > { %v1677_v41 = vadd.f32 %v2550_v9, %v1676_v40  ;;  %v2920_v42 = vpop.f32.mrb[82].mxu0 }
 0x7b0   : > { %v1688_v43 = vadd.f32 %v2920_v42, %v2550_v9  ;;  %v1679_v44 = vpop.f32.mrb[83].mxu0  ;;  %v1717_v45 = vmax.f32 %v1685_v39, 0.0 }
 0x7b1   : > { %v1680_v10 = vadd.f32 %v2550_v9, %v1679_v44  ;;  %v1715_v47 = vmax.f32 %v1677_v41, 0.0 }
 0x7b2   : > { %v1718_v46 = vmax.f32 %v1688_v43, 0.0 }
 0x7b3   : > { %v1716_v48 = vmax.f32 %v1680_v10, 0.0 }
 0x7b4   : > { %v1734_v49 = vpack.c.bf16 %v1718_v46, %v1717_v45 }
 0x7b5   : > { %v1733_v50 = vpack.c.bf16 %v1716_v48, %v1715_v47 }
 0x7b7   : > { %2937 = vmatprep.mubr.msk.bf16.mxu1 %vm946_vm1, %v1733_v50 }
 0x7b8   : > { %2938 = vmatmul.mubr.msk.bf16.gmra.mrb[64].mxu1 %vm946_vm1, %v1734_v49 }
 0x7bd   : > { %v2923_v51 = vpop.f32.mrb[84].mxu0 }
 0x7be   : > { %v1701_v52 = vadd.f32 %v2923_v51, %v2550_v9  ;;  %v1692_v53 = vpop.f32.mrb[85].mxu0 }
 0x7bf   : > { %v1693_v54 = vadd.f32 %v2550_v9, %v1692_v53  ;;  %v2924_v55 = vpop.f32.mrb[86].mxu0 }
 0x7c0   : > { %v1704_v56 = vadd.f32 %v2924_v55, %v2550_v9  ;;  %v1695_v57 = vpop.f32.mrb[87].mxu0  ;;  %v1721_v59 = vmax.f32 %v1701_v52, 0.0 }
 0x7c1   : > { %v1696_v58 = vadd.f32 %v2550_v9, %v1695_v57  ;;  %v1719_v61 = vmax.f32 %v1693_v54, 0.0  ;;  %v3105_v9 = vld [vmem:[#allocation5 + $0x2b4] ss:$8 sps:$4 sm:$0xff]  }
 0x7c2   : > { %v1722_v60 = vmax.f32 %v1704_v56, 0.0  ;;  %2200 = vmatprep.subr.bf16.mxu1 %v3105_v9  ;;  %v3112_v9 = vld [vmem:[#allocation5 + $0x2e0] ss:$8 sps:$4 sm:$0xff]  }
 0x7c3   : > { %v1720_v62 = vmax.f32 %v1696_v58, 0.0  ;;  %2201 = vmatpush1.bf16.msra.mxu1 %v3103_v11  ;;  %v3117_v11 = vld [vmem:[#allocation5 + $0x2f4] ss:$8 sps:$4 sm:$0xff]  }
 0x7c4   : > { %v1736_v63 = vpack.c.bf16 %v1722_v60, %v1721_v59  ;;  %2202 = vmatprep.subr.bf16.mxu1 %v3108_v12  ;;  %v3115_v12 = vld [vmem:[#allocation5 + $0x2f0] ss:$8 sps:$4 sm:$0xff]  }
 0x7c5   : > { %v1735_v0 = vpack.c.bf16 %v1720_v62, %v1719_v61 }
 0x7c7   : > { %2941 = vmatprep.mubr.msk.bf16.mxu1 %vm946_vm1, %v1735_v0  ;;  %2203 = vmatpush1.bf16.msra.mxu1 %v3106_v13  ;;  %v3283_v13 = vmov 0  }
 0x7c8   : > { %2942 = vmatmul.mubr.msk.bf16.gmra.mrb[68].mxu1 %vm946_vm1, %v1736_v63  ;;  %2204 = vmatprep.subr.bf16.mxu1 %v3111_v14  ;;  %v2571_v14 = vld [vmem:[#allocation7 + $0x12] ss:$0 sm:$0xff] }
 0x7c9   : > { %2226 = vmatprep.mubr.bf16.mxu1 %v3283_v13 }
 0x7cb   : > { %2205 = vmatpush1.bf16.msra.mxu1 %v3109_v15 }
 0x7cc   : > { %2206 = vmatprep.subr.bf16.mxu1 %v3114_v7 }
 0x7cf   : > { %2207 = vmatpush1.bf16.msra.mxu1 %v3112_v9  ;;  %v2094_v9 = vld [vmem:[#allocation7 + $0x14] sm:$0x3] }
 0x7d0   : > { %2208 = vmatprep.subr.bf16.mxu1 %v3117_v11 }
 0x7d3   : > { %2209 = vmatpush1.bf16.msra.mxu1 %v3115_v12 }
 0x86b   : > { %v2931_v17 = vpop.f32.mrb[56].mxu1 }
 0x86c   : > { %v1822_v18 = vadd.f32 %v2931_v17, %v2560_v16  ;;  %v1813_v19 = vpop.f32.mrb[57].mxu1 }
 0x86d   : > { %v1814_v20 = vadd.f32 %v2560_v16, %v1813_v19  ;;  %v2932_v21 = vpop.f32.mrb[58].mxu1 }
 0x86e   : > { %v1825_v22 = vadd.f32 %v2932_v21, %v2560_v16  ;;  %v1816_v23 = vpop.f32.mrb[59].mxu1  ;;  %v1878_v25 = vmax.f32 %v1822_v18, 0.0 }
 0x86f   : > { %v1817_v24 = vadd.f32 %v2560_v16, %v1816_v23  ;;  %v1876_v27 = vmax.f32 %v1814_v20, 0.0 }
 0x870   : > { %v1879_v26 = vmax.f32 %v1825_v22, 0.0 }
 0x871   : > { %v1877_v28 = vmax.f32 %v1817_v24, 0.0 }
 0x872   : > { %v1903_v29 = vpack.c.bf16 %v1879_v26, %v1878_v25 }
 0x873   : > { %v1902_v30 = vpack.c.bf16 %v1877_v28, %v1876_v27 }
 0x875   : > { %2953 = vmatprep.mubr.msk.bf16.mxu0 %vm776_vm0, %v1902_v30 }
 0x876   : > { %2954 = vmatmul.mubr.msk.bf16.vlgmr.msra.gmra.mrb[88].mxu0 %vm776_vm0, %v1903_v29 }
 0x87b   : > { %v2935_v31 = vpop.f32.mrb[60].mxu1 }
 0x87c   : > { %v1838_v32 = vadd.f32 %v2935_v31, %v2560_v16  ;;  %v1829_v33 = vpop.f32.mrb[61].mxu1 }
 0x87d   : > { %v1830_v34 = vadd.f32 %v2560_v16, %v1829_v33  ;;  %v2936_v8 = vpop.f32.mrb[62].mxu1 }
 0x87e   : > { %v1841_v35 = vadd.f32 %v2936_v8, %v2560_v16  ;;  %v1832_v36 = vpop.f32.mrb[63].mxu1  ;;  %v1882_v38 = vmax.f32 %v1838_v32, 0.0 }
 0x87f   : > { %v1833_v37 = vadd.f32 %v2560_v16, %v1832_v36  ;;  %v1880_v40 = vmax.f32 %v1830_v34, 0.0 }
 0x880   : > { %v1883_v39 = vmax.f32 %v1841_v35, 0.0 }
 0x881   : > { %v1881_v41 = vmax.f32 %v1833_v37, 0.0 }
 0x882   : > { %v1905_v42 = vpack.c.bf16 %v1883_v39, %v1882_v38 }
 0x883   : > { %v1904_v43 = vpack.c.bf16 %v1881_v41, %v1880_v40 }
 0x885   : > { %2957 = vmatprep.mubr.msk.bf16.mxu0 %vm776_vm0, %v1904_v43 }
 0x886   : > { %2958 = vmatmul.mubr.msk.bf16.gmra.mrb[92].mxu0 %vm776_vm0, %v1905_v42 }
 0x88b   : > { %v2939_v44 = vpop.f32.mrb[64].mxu1 }
 0x88c   : > { %v1854_v10 = vadd.f32 %v2939_v44, %v2560_v16  ;;  %v1845_v45 = vpop.f32.mrb[65].mxu1 }
 0x88d   : > { %v1846_v46 = vadd.f32 %v2560_v16, %v1845_v45  ;;  %v2940_v47 = vpop.f32.mrb[66].mxu1 }
 0x88e   : > { %v1857_v48 = vadd.f32 %v2940_v47, %v2560_v16  ;;  %v1848_v49 = vpop.f32.mrb[67].mxu1  ;;  %v1886_v51 = vmax.f32 %v1854_v10, 0.0 }
 0x88f   : > { %v1849_v50 = vadd.f32 %v2560_v16, %v1848_v49  ;;  %v1884_v53 = vmax.f32 %v1846_v46, 0.0 }
 0x890   : > { %v1887_v52 = vmax.f32 %v1857_v48, 0.0 }
 0x891   : > { %v1885_v54 = vmax.f32 %v1849_v50, 0.0 }
 0x892   : > { %v1907_v55 = vpack.c.bf16 %v1887_v52, %v1886_v51 }
 0x893   : > { %v1906_v56 = vpack.c.bf16 %v1885_v54, %v1884_v53 }
 0x895   : > { %2961 = vmatprep.mubr.msk.bf16.mxu0 %vm776_vm0, %v1906_v56 }
 0x896   : > { %2962 = vmatmul.mubr.msk.bf16.gmra.mrb[96].mxu0 %vm776_vm0, %v1907_v55 }
 0x89b   : > { %v2943_v57 = vpop.f32.mrb[68].mxu1 }
 0x89c   : > { %v1870_v58 = vadd.f32 %v2943_v57, %v2560_v16  ;;  %v1861_v59 = vpop.f32.mrb[69].mxu1 }
 0x89d   : > { %v1862_v60 = vadd.f32 %v2560_v16, %v1861_v59  ;;  %v2944_v61 = vpop.f32.mrb[70].mxu1 }
 0x89e   : > { %v1873_v62 = vadd.f32 %v2944_v61, %v2560_v16  ;;  %v1864_v63 = vpop.f32.mrb[71].mxu1  ;;  %v1890_v1 = vmax.f32 %v1870_v58, 0.0 }
 0x89f   : > { %v1865_v0 = vadd.f32 %v2560_v16, %v1864_v63  ;;  %v1888_v3 = vmax.f32 %v1862_v60, 0.0 }
 0x8a0   : > { %v1891_v2 = vmax.f32 %v1873_v62, 0.0 }
 0x8a1   : > { %v1889_v4 = vmax.f32 %v1865_v0, 0.0 }
 0x8a2   : > { %v1909_v5 = vpack.c.bf16 %v1891_v2, %v1890_v1 }
 0x8a3   : > { %v1908_v6 = vpack.c.bf16 %v1889_v4, %v1888_v3 }
 0x8a5   : > { %2965 = vmatprep.mubr.msk.bf16.mxu0 %vm776_vm0, %v1908_v6 }
 0x8a6   : > { %2966 = vmatmul.mubr.msk.bf16.gmra.mrb[100].mxu0 %vm776_vm0, %v1909_v5  ;;  %v2104_v5 = vlaneseq }
 0x8a8   : > { %v2105_v6 = vshrl.u32 %v2104_v5, 7 }
 0x8aa   : > { %v2106_v7 = vsub.s32 0, %v2105_v6  ;;  %v2110_v11 = vsub.s32 1, %v2105_v6 }
 0x8ac   : > { %v3622_v12 = vrot.slane %v2094_v9, %v2106_v7 }
 0x949   : > { %v2955_v15 = vpop.f32.mrb[88].mxu0 }
 0x94a   : > { %v2007_v16 = vadd.f32 %v2955_v15, %v2571_v14  ;;  %v1998_v17 = vpop.f32.mrb[89].mxu0  ;;  %v3624_v15 = vrot.slane %v2094_v9, %v2110_v11 }
 0x94b   : > { %v1999_v18 = vadd.f32 %v2571_v14, %v1998_v17  ;;  %v2956_v19 = vpop.f32.mrb[90].mxu0 }
 0x94c   : > { %v2010_v20 = vadd.f32 %v2956_v19, %v2571_v14  ;;  %v2001_v21 = vpop.f32.mrb[91].mxu0  ;;  %v2063_v23 = vmax.f32 %v2007_v16, 0.0 }
 0x94d   : > { %v2002_v22 = vadd.f32 %v2571_v14, %v2001_v21  ;;  %v2061_v25 = vmax.f32 %v1999_v18, 0.0 }
 0x94e   : > { %v2064_v24 = vmax.f32 %v2010_v20, 0.0 }
 0x94f   : > { %v2062_v26 = vmax.f32 %v2002_v22, 0.0 }
 0x950   : > { %v2096_v27 = vpack.c.bf16 %v2064_v24, %v2063_v23 }
 0x951   : > { %v2095_v28 = vpack.c.bf16 %v2062_v26, %v2061_v25 }
 0x953   : > { %2227 = vmatmul.mubr.bf16.vlgmr.msra.gmra.mrb[72].mxu1 %v2095_v28 }
 0x954   : > { %2236 = vmatprep.mubr.bf16.mxu1 %v3283_v13 }
 0x959   : > { %v2959_v29 = vpop.f32.mrb[92].mxu0 }
 0x95a   : > { %v2023_v30 = vadd.f32 %v2959_v29, %v2571_v14  ;;  %v2014_v31 = vpop.f32.mrb[93].mxu0 }
 0x95b   : > { %v2015_v32 = vadd.f32 %v2571_v14, %v2014_v31  ;;  %v2960_v33 = vpop.f32.mrb[94].mxu0  ;;  %2237 = vmatmul.mubr.bf16.gmra.mrb[76].mxu1 %v2096_v27 }
 0x95c   : > { %v2026_v34 = vadd.f32 %v2960_v33, %v2571_v14  ;;  %v2017_v8 = vpop.f32.mrb[95].mxu0  ;;  %2246 = vmatprep.mubr.bf16.mxu1 %v3283_v13  ;;  %v2067_v36 = vmax.f32 %v2023_v30, 0.0 }
 0x95d   : > { %v2018_v35 = vadd.f32 %v2571_v14, %v2017_v8  ;;  %v2065_v38 = vmax.f32 %v2015_v32, 0.0 }
 0x95e   : > { %v2068_v37 = vmax.f32 %v2026_v34, 0.0 }
 0x95f   : > { %v2066_v39 = vmax.f32 %v2018_v35, 0.0 }
 0x960   : > { %v2098_v40 = vpack.c.bf16 %v2068_v37, %v2067_v36 }
 0x961   : > { %v2097_v41 = vpack.c.bf16 %v2066_v39, %v2065_v38 }
 0x963   : > { %2247 = vmatmul.mubr.bf16.gmra.mrb[80].mxu1 %v2097_v41 }
 0x964   : > { %2256 = vmatprep.mubr.bf16.mxu1 %v3283_v13 }
 0x969   : > { %v2963_v42 = vpop.f32.mrb[96].mxu0 }
 0x96a   : > { %v2039_v43 = vadd.f32 %v2963_v42, %v2571_v14  ;;  %v2030_v44 = vpop.f32.mrb[97].mxu0 }
 0x96b   : > { %v2031_v10 = vadd.f32 %v2571_v14, %v2030_v44  ;;  %v2964_v45 = vpop.f32.mrb[98].mxu0  ;;  %2257 = vmatmul.mubr.bf16.gmra.mrb[84].mxu1 %v2098_v40 }
 0x96c   : > { %v2042_v46 = vadd.f32 %v2964_v45, %v2571_v14  ;;  %v2033_v47 = vpop.f32.mrb[99].mxu0  ;;  %2266 = vmatprep.mubr.bf16.mxu1 %v3283_v13  ;;  %v2071_v49 = vmax.f32 %v2039_v43, 0.0 }
 0x96d   : > { %v2034_v48 = vadd.f32 %v2571_v14, %v2033_v47  ;;  %v2069_v51 = vmax.f32 %v2031_v10, 0.0 }
 0x96e   : > { %v2072_v50 = vmax.f32 %v2042_v46, 0.0 }
 0x96f   : > { %v2070_v52 = vmax.f32 %v2034_v48, 0.0 }
 0x970   : > { %v2100_v53 = vpack.c.bf16 %v2072_v50, %v2071_v49 }
 0x971   : > { %v2099_v54 = vpack.c.bf16 %v2070_v52, %v2069_v51 }
 0x973   : > { %2267 = vmatmul.mubr.bf16.gmra.mrb[88].mxu1 %v2099_v54 }
 0x974   : > { %2276 = vmatprep.mubr.bf16.mxu1 %v3283_v13 }
 0x979   : > { %v2967_v55 = vpop.f32.mrb[100].mxu0 }
 0x97a   : > { %v2055_v56 = vadd.f32 %v2967_v55, %v2571_v14  ;;  %v2046_v57 = vpop.f32.mrb[101].mxu0 }
 0x97b   : > { %v2047_v58 = vadd.f32 %v2571_v14, %v2046_v57  ;;  %v2968_v59 = vpop.f32.mrb[102].mxu0  ;;  %2277 = vmatmul.mubr.bf16.gmra.mrb[92].mxu1 %v2100_v53 }
 0x97c   : > { %v2058_v60 = vadd.f32 %v2968_v59, %v2571_v14  ;;  %v2049_v61 = vpop.f32.mrb[103].mxu0  ;;  %2286 = vmatprep.mubr.bf16.mxu1 %v3283_v13  ;;  %v2075_v63 = vmax.f32 %v2055_v56, 0.0 }
 0x97d   : > { %v2050_v62 = vadd.f32 %v2571_v14, %v2049_v61  ;;  %v2073_v1 = vmax.f32 %v2047_v58, 0.0 }
 0x97e   : > { %v2076_v0 = vmax.f32 %v2058_v60, 0.0 }
 0x97f   : > { %v2074_v2 = vmax.f32 %v2050_v62, 0.0 }
 0x980   : > { %v2102_v3 = vpack.c.bf16 %v2076_v0, %v2075_v63 }
 0x981   : > { %v2101_v4 = vpack.c.bf16 %v2074_v2, %v2073_v1 }
 0x983   : > { %2287 = vmatmul.mubr.bf16.gmra.mrb[96].mxu1 %v2101_v4 }
 0x984   : > { %2296 = vmatprep.mubr.bf16.mxu1 %v3283_v13 }
 0x98b   : > { %2297 = vmatmul.mubr.bf16.gmra.mrb[100].mxu1 %v2102_v3 }
 0xa26   : > { %v2228_v14 = vpop.f32.mrb[72].mxu1 }
 0xa27   : > { %v2229_v16 = vadd.f32 %v2228_v14, %v3622_v12  ;;  %v2230_v17 = vpop.f32.mrb[73].mxu1 }
 0xa28   : > { %v2231_v18 = vadd.f32 %v2230_v17, %v3624_v15  ;;  %v2232_v19 = vpop.f32.mrb[74].mxu1 }
 0xa29   : > { %2307 = vst [vmem:[%s3630_s23] sm:$0xff] %v2229_v16  ;;  %v2233_v13 = vadd.f32 %v2232_v19, %v3622_v12  ;;  %v2234_v20 = vpop.f32.mrb[75].mxu1 }
 0xa2a   : > { %2308 = vst [vmem:[%s3630_s23 + $0x8] sm:$0xff] %v2231_v18  ;;  %v2235_v21 = vadd.f32 %v2234_v20, %v3624_v15 }
 0xa2b   : > { %2309 = vst [vmem:[%s3630_s23 + $0x10] sm:$0xff] %v2233_v13 }
 0xa2c   : > { %2310 = vst [vmem:[%s3630_s23 + $0x18] sm:$0xff] %v2235_v21 }
 0xa2e   : > { %v2238_v22 = vpop.f32.mrb[76].mxu1 }
 0xa2f   : > { %v2239_v23 = vadd.f32 %v2238_v22, %v3622_v12  ;;  %v2240_v24 = vpop.f32.mrb[77].mxu1 }
 0xa30   : > { %v2241_v25 = vadd.f32 %v2240_v24, %v3624_v15  ;;  %v2242_v26 = vpop.f32.mrb[78].mxu1 }
 0xa31   : > { %2311 = vst [vmem:[%s3630_s23 + $0x20] sm:$0xff] %v2239_v23  ;;  %v2243_v27 = vadd.f32 %v2242_v26, %v3622_v12  ;;  %v2244_v28 = vpop.f32.mrb[79].mxu1 }
 0xa32   : > { %2312 = vst [vmem:[%s3630_s23 + $0x28] sm:$0xff] %v2241_v25  ;;  %v2245_v29 = vadd.f32 %v2244_v28, %v3624_v15 }
 0xa33   : > { %2313 = vst [vmem:[%s3630_s23 + $0x30] sm:$0xff] %v2243_v27 }
 0xa34   : > { %2314 = vst [vmem:[%s3630_s23 + $0x38] sm:$0xff] %v2245_v29 }
 0xa36   : > { %v2248_v30 = vpop.f32.mrb[80].mxu1 }
 0xa37   : > { %v2249_v31 = vadd.f32 %v2248_v30, %v3622_v12  ;;  %v2250_v32 = vpop.f32.mrb[81].mxu1 }
 0xa38   : > { %v2251_v33 = vadd.f32 %v2250_v32, %v3624_v15  ;;  %v2252_v34 = vpop.f32.mrb[82].mxu1 }
 0xa39   : > { %2315 = vst [vmem:[%s3630_s23 + $0x40] sm:$0xff] %v2249_v31  ;;  %v2253_v8 = vadd.f32 %v2252_v34, %v3622_v12  ;;  %v2254_v35 = vpop.f32.mrb[83].mxu1 }
 0xa3a   : > { %2316 = vst [vmem:[%s3630_s23 + $0x48] sm:$0xff] %v2251_v33  ;;  %v2255_v36 = vadd.f32 %v2254_v35, %v3624_v15 }
 0xa3b   : > { %2317 = vst [vmem:[%s3630_s23 + $0x50] sm:$0xff] %v2253_v8 }
 0xa3c   : > { %2318 = vst [vmem:[%s3630_s23 + $0x58] sm:$0xff] %v2255_v36 }
 0xa3e   : > { %v2258_v37 = vpop.f32.mrb[84].mxu1 }
 0xa3f   : > { %v2259_v38 = vadd.f32 %v2258_v37, %v3622_v12  ;;  %v2260_v39 = vpop.f32.mrb[85].mxu1 }
 0xa40   : > { %v2261_v40 = vadd.f32 %v2260_v39, %v3624_v15  ;;  %v2262_v41 = vpop.f32.mrb[86].mxu1 }
 0xa41   : > { %2319 = vst [vmem:[%s3630_s23 + $0x60] sm:$0xff] %v2259_v38  ;;  %v2263_v42 = vadd.f32 %v2262_v41, %v3622_v12  ;;  %v2264_v43 = vpop.f32.mrb[87].mxu1 }
 0xa42   : > { %2320 = vst [vmem:[%s3630_s23 + $0x68] sm:$0xff] %v2261_v40  ;;  %v2265_v44 = vadd.f32 %v2264_v43, %v3624_v15 }
 0xa43   : > { %2321 = vst [vmem:[%s3630_s23 + $0x70] sm:$0xff] %v2263_v42 }
 0xa44   : > { %2322 = vst [vmem:[%s3630_s23 + $0x78] sm:$0xff] %v2265_v44 }
 0xa46   : > { %v2268_v10 = vpop.f32.mrb[88].mxu1 }
 0xa47   : > { %v2269_v45 = vadd.f32 %v2268_v10, %v3622_v12  ;;  %v2270_v46 = vpop.f32.mrb[89].mxu1 }
 0xa48   : > { %v2271_v47 = vadd.f32 %v2270_v46, %v3624_v15  ;;  %v2272_v48 = vpop.f32.mrb[90].mxu1 }
 0xa49   : > { %2323 = vst [vmem:[%s3630_s23 + $0x80] sm:$0xff] %v2269_v45  ;;  %v2273_v49 = vadd.f32 %v2272_v48, %v3622_v12  ;;  %v2274_v50 = vpop.f32.mrb[91].mxu1 }
 0xa4a   : > { %2324 = vst [vmem:[%s3630_s23 + $0x88] sm:$0xff] %v2271_v47  ;;  %v2275_v51 = vadd.f32 %v2274_v50, %v3624_v15 }
 0xa4b   : > { %2325 = vst [vmem:[%s3630_s23 + $0x90] sm:$0xff] %v2273_v49 }
 0xa4c   : > { %2326 = vst [vmem:[%s3630_s23 + $0x98] sm:$0xff] %v2275_v51 }
 0xa4e   : > { %v2278_v52 = vpop.f32.mrb[92].mxu1 }
 0xa4f   : > { %v2279_v53 = vadd.f32 %v2278_v52, %v3622_v12  ;;  %v2280_v54 = vpop.f32.mrb[93].mxu1 }
 0xa50   : > { %v2281_v55 = vadd.f32 %v2280_v54, %v3624_v15  ;;  %v2282_v56 = vpop.f32.mrb[94].mxu1 }
 0xa51   : > { %2327 = vst [vmem:[%s3630_s23 + $0xa0] sm:$0xff] %v2279_v53  ;;  %v2283_v57 = vadd.f32 %v2282_v56, %v3622_v12  ;;  %v2284_v58 = vpop.f32.mrb[95].mxu1 }
 0xa52   : > { %2328 = vst [vmem:[%s3630_s23 + $0xa8] sm:$0xff] %v2281_v55  ;;  %v2285_v59 = vadd.f32 %v2284_v58, %v3624_v15 }
 0xa53   : > { %2329 = vst [vmem:[%s3630_s23 + $0xb0] sm:$0xff] %v2283_v57 }
 0xa54   : > { %2330 = vst [vmem:[%s3630_s23 + $0xb8] sm:$0xff] %v2285_v59 }
 0xa56   : > { %v2288_v60 = vpop.f32.mrb[96].mxu1 }
 0xa57   : > { %v2289_v61 = vadd.f32 %v2288_v60, %v3622_v12  ;;  %v2290_v62 = vpop.f32.mrb[97].mxu1 }
 0xa58   : > { %v2291_v63 = vadd.f32 %v2290_v62, %v3624_v15  ;;  %v2292_v0 = vpop.f32.mrb[98].mxu1 }
 0xa59   : > { %2331 = vst [vmem:[%s3630_s23 + $0xc0] sm:$0xff] %v2289_v61  ;;  %v2293_v1 = vadd.f32 %v2292_v0, %v3622_v12  ;;  %v2294_v2 = vpop.f32.mrb[99].mxu1 }
 0xa5a   : > { %2332 = vst [vmem:[%s3630_s23 + $0xc8] sm:$0xff] %v2291_v63  ;;  %v2295_v3 = vadd.f32 %v2294_v2, %v3624_v15 }
 0xa5b   : > { %2333 = vst [vmem:[%s3630_s23 + $0xd0] sm:$0xff] %v2293_v1 }
 0xa5c   : > { %2334 = vst [vmem:[%s3630_s23 + $0xd8] sm:$0xff] %v2295_v3 }
 0xa5e   : > { %v2298_v4 = vpop.f32.mrb[100].mxu1  ;;  %2346 = sbr.rel (!%p3774_p8) target bundleno = 2689 (0xa81), region = 48 }
 0xa5f   : > { %v2299_v5 = vadd.f32 %v2298_v4, %v3622_v12  ;;  %v2300_v6 = vpop.f32.mrb[101].mxu1 }
 0xa60   : > { %v2301_v7 = vadd.f32 %v2300_v6, %v3624_v15  ;;  %v2302_v9 = vpop.f32.mrb[102].mxu1 }
 0xa61   : > { %2335 = vst [vmem:[%s3630_s23 + $0xe0] sm:$0xff] %v2299_v5  ;;  %v2303_v11 = vadd.f32 %v2302_v9, %v3622_v12  ;;  %v2304_v14 = vpop.f32.mrb[103].mxu1 }
 0xa62   : > { %2336 = vst [vmem:[%s3630_s23 + $0xe8] sm:$0xff] %v2301_v7  ;;  %v2305_v16 = vadd.f32 %v2304_v14, %v3624_v15 }
 0xa63   : > { %2337 = vst [vmem:[%s3630_s23 + $0xf0] sm:$0xff] %v2303_v11 }
 0xa64   : > { %2338 = vst [vmem:[%s3630_s23 + $0xf8] sm:$0xff] %v2305_v16 }
 0xa65   : > { %s3783_s9 = smov (!%p2349_p9, %s2348_s9), 16 }
 0xa66   : > { %s3698_s28 = sshll.u32 %s3783_s9, 8 }
 0xa67   : > { %s2354_s17 = ssub.s32 4096, %s3698_s28 }
 0xa68   : > { %2355 = vsyncadd %s2340_s26, %s2354_s17  ;;  %p2604_p10 = scmp.ne.s32.totalorder %s3698_s28, 0  ;;  %s2616_s24 = sshll.u32 %s3328_s16, 12 }
 0xa69   : > { %s3708_s7 = scalar_lea.hbm %s3759_s3, %s2616_s24  ;;  %s2361_s29 = sshll.u32 %s3630_s23, 4  ;;  %s3711_s29 = int_to_ptr.vmem [resolvable:$true] %s2361_s29 }
 0xa6a   : > { %s3202_s4 = scalar_lea.vmem %s3711_s29, %s3698_s28  ;;  %s3284_s22 = smov [#allocation8]  }
 0xa6b   : > { %p3203_p1 = scmp.ne.s32.totalorder %s3711_s29, %s3202_s4  ;;  %s3206_s10 = sshll.u32 %s3284_s22, 4  ;;  %s3207_s10 = int_to_ptr.vmem [resolvable:$false] %s3206_s10 }
 0xa6c   : > { %s3208_s16 = scalar_lea.vmem %s3207_s10, 8192  ;;  %p3209_p5 = scmp.lt.s32.totalorder %s3711_s29, %s3207_s10 }
 0xa6d   : > { %p3204_p4 = pnand %p3203_p1, %p2604_p10  ;;  %p3210_p6 = scmp.lt.s32.totalorder %s3208_s16, %s3202_s4 }
 0xa6f   : > { %p3205_p3 = pneg %p3204_p4  ;;  %p3211_p11 = por %p3210_p6, %p3209_p5 }
 0xa71   : > { %p3212_p13 = pnand %p3211_p11, %p3205_p3 }
 0xa73   : > { %3215 = shalt.err (!%p3212_p13)
}
 0xa74   : > { %s3216_s11 = scalar_lea.hbm %s3708_s7, %s3698_s28  ;;  %s3220_s30 = scalar_lea.hbm %s3759_s3, 16128 }
 0xa75   : > { %p3217_p12 = scmp.ne.s32.totalorder %s3708_s7, %s3216_s11  ;;  %p3221_p7 = scmp.lt.u32.totalorder %s3708_s7, %s3759_s3 }
 0xa76   : > { %p3222_p8 = scmp.lt.u32.totalorder %s3220_s30, %s3216_s11  ;;  %p3224_p1 = scmp.lt.u32.totalorder %s3216_s11, %s3708_s7 }
 0xa77   : > { %p3218_p0 = pnand %p3217_p12, %p2604_p10 }
 0xa78   : > { %p3223_p9 = por %p3222_p8, %p3221_p7 }
 0xa79   : > { %p3219_p2 = pneg %p3218_p0 }
 0xa7a   : > { %p3225_p4 = por %p3224_p1, %p3223_p9 }
 0xa7c   : > { %p3226_p3 = pnand %p3225_p4, %p3219_p2 }
 0xa7e   : > { %3229 = shalt.err (!%p3226_p3)
}
 0xa7f   : > { %s3285_s9 = smov 256   ;;  %s3286_s17 = smov 16  }
 0xa80   : > { %2367 = dma.vmem_to_hbm [thread:$0]  (%p2604_p10), %s3711_s29, %s3698_s28, %s3708_s7, %s2340_s26, %s3285_s9, %s3285_s9, %s3286_s17  }
 0xa81 PF: > { %p3012_p5 = scmp.ge.s32.totalorder %s3272_s15, 2  ;;  %s2376_s24 = sand.u32 1, %s3260_s12  }
 0xa82   : > { %p3775_p6 = scmp.ne.s32.totalorder %s3766_s25, 0  ;;  %s2377_s5 = scalar_lea.sflag [#allocation4], %s2376_s24 }
 0xa84   : > { %p3005_p11 = pnand %p3012_p5, %p3775_p6 }
 0xa86   : > { %3255 = dma.done.wait (!%p3005_p11), %s2377_s5, 4096  }
 0xa87   : > { %3257 = vsyncadd (!%p3005_p11), %s2377_s5, 4294963200  ;;  %p17_p13 = scmp.ge.s32.totalorder %s3332_s18, 6   ;;  %s3776_s12 = smov %s3264_s13 }
 0xa88   : > { %s3777_s13 = smov %s3268_s14  ;;  %s3778_s14 = smov %s3344_s21 }
 0xa89   : > { %s3779_s15 = smov %s3332_s18  ;;  %19 = sbr.rel (!%p17_p13) target bundleno = 6 (0x6), region = 95 }
 0xa90   :  { %2382 = vsyncpa [#allocation3], 1 }
 0xa91   :  { %2384 = vsyncpa [#allocation3 + $0x1], 1 }
 0xa92   :  { %2385 = vsyncpa [#allocation6], 1 }
 0xa93   :  { %2386 = vsyncpa [#allocation4], 1 }
 0xa94   :  { %2388 = vsyncpa [#allocation4 + $0x1], 1 }

</bundles_post_ra>
